<compile_context>
chip_gen: v7x
topology: tpu7x:2x2x1
jax: 0.10.0
libtpu: 0.0.40
codegen_flags: <defaults>
</compile_context>

<pallas_src>
import jax
import jax.numpy as jnp
from jax import lax
from jax.experimental import pallas as pl
from jax.experimental.pallas import tpu as pltpu

# ----- model config (small, consistent with module's __init__ arguments) -----
B, S = 2, 8            # batch, seq len
D = 32                 # token embed dim = num_heads * head_dim
H = 4                  # num_heads
HD = D // H            # head_dim
V = 64                 # vocab size
F = 64                 # MLP hidden dim
NUM_LAYERS = 2
MAX_SEQ_LEN = 16
EPS = 1e-5
NEG_INF = -1e30

BS_TOT = B * S                     # flattened rows
VPAD = 128                         # lane-dense padded vocab for the logit store
INV_SQRT_HD = 1.0 / (HD ** 0.5)


# ----------------------------- kernel helpers -------------------------------
def _rmsnorm(x, scale):
    ms = jnp.mean(x * x, axis=-1, keepdims=True)
    return x * lax.rsqrt(ms + EPS) * scale


# ------------------------------ fused Pallas kernel --------------------------
def _decoder_kernel(tok_ref,                       # SMEM (BS_TOT,) int32 (scalar prefetch)
                    emb_ref,                       # (V, D)   f32
                    attn_sc_ref, wq_ref, wk_ref, wv_ref, wo_ref,
                    mlp_sc_ref, w1_ref, w3_ref, w2_ref,
                    cos_ref, sin_ref,              # (BS_TOT, HD) f32
                    bias_ref,                      # (BS_TOT, BS_TOT) f32 additive mask
                    final_sc_ref,                  # (1, D)   f32
                    wout_ref,                      # (D, VPAD) bf16 (tied, transposed)
                    logits_ref,                    # out (BS_TOT, VPAD) f32
                    h_ref):                        # scratch (BS_TOT, D) f32
    l = pl.program_id(0)

    # ---- token embedding: O(BS*D) row gather, only at the first grid step ----
    @pl.when(l == 0)
    def _embed():
        for i in range(BS_TOT):                    # unrolled, 16 rows
            t = tok_ref[i]
            h_ref[pl.ds(i, 1), :] = emb_ref[pl.ds(t, 1), :]

    x = h_ref[...]                                 # (BS, D) f32, VMEM-resident

    # ---------------------------- self attention -----------------------------
    xn = _rmsnorm(x, attn_sc_ref[...])
    xnb = xn.astype(jnp.bfloat16)
    q = jnp.dot(xnb, wq_ref[...], preferred_element_type=jnp.float32)
    k = jnp.dot(xnb, wk_ref[...], preferred_element_type=jnp.float32)
    v = jnp.dot(xnb, wv_ref[...], preferred_element_type=jnp.float32)

    def to_heads(t):                               # (BS, D) -> (H, BS, HD)
        return jnp.stack([t[:, hh * HD:(hh + 1) * HD] for hh in range(H)], axis=0)

    cos = cos_ref[...][None]                       # (1, BS, HD)
    sin = sin_ref[...][None]

    def rope(t):                                   # one VPU pass over all heads
        tr = jnp.concatenate([-t[..., HD // 2:], t[..., :HD // 2]], axis=-1)
        return t * cos + tr * sin

    qh = rope(to_heads(q))                         # (H, BS, HD) f32
    kh = rope(to_heads(k))
    vh = to_heads(v)

    # batched-head attention; softmax math stays f32
    scores = jnp.einsum('hqd,hkd->hqk', qh, kh,
                        preferred_element_type=jnp.float32) * INV_SQRT_HD
    scores = scores + bias_ref[...][None]          # block-diagonal causal bias
    m = jnp.max(scores, axis=-1, keepdims=True)
    e = jnp.exp(scores - m)
    p = e * pl.reciprocal(jnp.sum(e, axis=-1, keepdims=True), approx=True)
    ctx = jnp.einsum('hqk,hkd->hqd', p, vh, preferred_element_type=jnp.float32)
    attn = jnp.concatenate([ctx[hh] for hh in range(H)], axis=-1)   # (BS, D)
    attn = jnp.dot(attn.astype(jnp.bfloat16), wo_ref[...],
                   preferred_element_type=jnp.float32)
    h1 = x + attn

    # ------------------------------ SwiGLU MLP --------------------------------
    xn2 = _rmsnorm(h1, mlp_sc_ref[...])
    x2b = xn2.astype(jnp.bfloat16)
    g = jnp.dot(x2b, w1_ref[...], preferred_element_type=jnp.float32)
    u = jnp.dot(x2b, w3_ref[...], preferred_element_type=jnp.float32)
    gated = g * pl.reciprocal(1.0 + jnp.exp(-g), approx=True) * u   # silu(g) * u
    mlp = jnp.dot(gated.astype(jnp.bfloat16), w2_ref[...],
                  preferred_element_type=jnp.float32)
    h_new = h1 + mlp
    h_ref[...] = h_new                             # carried to the next layer step

    # ------ final RMSNorm + tied output projection (last layer step only) -----
    @pl.when(l == NUM_LAYERS - 1)
    def _final():
        hn = _rmsnorm(h_new, final_sc_ref[...])
        logits_ref[...] = jnp.dot(hn.astype(jnp.bfloat16), wout_ref[...],
                                  preferred_element_type=jnp.float32)


# ----------------------------- Python wrapper --------------------------------
def rope_tables(seq_len, head_dim):
    pos = jnp.arange(seq_len, dtype=jnp.float32)
    inv_freq = 1.0 / (10000.0 ** (jnp.arange(0, head_dim, 2, dtype=jnp.float32) / head_dim))
    freqs = pos[:, None] * inv_freq[None, :]
    cos = jnp.concatenate([jnp.cos(freqs), jnp.cos(freqs)], axis=-1)
    sin = jnp.concatenate([jnp.sin(freqs), jnp.sin(freqs)], axis=-1)
    return cos, sin


@jax.jit
def transformer_decoder_forward(tokens, params):
    # mask=None / no KV caches -> default causal masking inside the kernel
    Bb, Ss = tokens.shape
    assert Ss <= MAX_SEQ_LEN
    bs = Bb * Ss

    # --- wrapper-side layout plumbing (free): stacked bf16 weights, tiled RoPE
    #     tables, block-diagonal causal bias, lane-dense padded tied LM head ---
    cos, sin = rope_tables(Ss, HD)                 # (S, HD)
    cos_f = jnp.tile(cos, (Bb, 1))                 # (B*S, HD)
    sin_f = jnp.tile(sin, (Bb, 1))

    def stk(name, dt):
        return jnp.stack([lp[name] for lp in params["layers"]]).astype(dt)

    attn_sc = stk("attn_scale", jnp.float32)       # (L, 1, D)
    mlp_sc = stk("mlp_scale", jnp.float32)
    wq = stk("wq", jnp.bfloat16)                   # (L, D, D)
    wk = stk("wk", jnp.bfloat16)
    wv = stk("wv", jnp.bfloat16)
    wo = stk("wo", jnp.bfloat16)
    w1 = stk("w1", jnp.bfloat16)                   # (L, D, F)
    w3 = stk("w3", jnp.bfloat16)
    w2 = stk("w2", jnp.bfloat16)                   # (L, F, D)

    rows = jnp.arange(bs)
    same_b = (rows[:, None] // Ss) == (rows[None, :] // Ss)
    causal = rows[:, None] >= rows[None, :]
    bias = jnp.where(same_b & causal, 0.0, NEG_INF).astype(jnp.float32)  # (BS, BS)

    # tied embeddings -> LM head = emb.T, pre-transposed + padded to 128 lanes
    wout_t = params["wout"].T.astype(jnp.bfloat16)           # (D, V)
    wout_t = jnp.pad(wout_t, ((0, 0), (0, VPAD - V)))        # (D, VPAD)

    tok_flat = tokens.reshape(bs).astype(jnp.int32)

    grid_spec = pltpu.PrefetchScalarGridSpec(
        num_scalar_prefetch=1,                     # tokens -> SMEM
        grid=(NUM_LAYERS,),
        in_specs=[
            pl.BlockSpec((V, D), lambda l, tok: (0, 0)),            # emb table
            pl.BlockSpec((None, 1, D), lambda l, tok: (l, 0, 0)),   # attn scale
            pl.BlockSpec((None, D, D), lambda l, tok: (l, 0, 0)),   # wq
            pl.BlockSpec((None, D, D), lambda l, tok: (l, 0, 0)),   # wk
            pl.BlockSpec((None, D, D), lambda l, tok: (l, 0, 0)),   # wv
            pl.BlockSpec((None, D, D), lambda l, tok: (l, 0, 0)),   # wo
            pl.BlockSpec((None, 1, D), lambda l, tok: (l, 0, 0)),   # mlp scale
            pl.BlockSpec((None, D, F), lambda l, tok: (l, 0, 0)),   # w1
            pl.BlockSpec((None, D, F), lambda l, tok: (l, 0, 0)),   # w3
            pl.BlockSpec((None, F, D), lambda l, tok: (l, 0, 0)),   # w2
            pl.BlockSpec((bs, HD), lambda l, tok: (0, 0)),          # cos
            pl.BlockSpec((bs, HD), lambda l, tok: (0, 0)),          # sin
            pl.BlockSpec((bs, bs), lambda l, tok: (0, 0)),          # causal bias
            pl.BlockSpec((1, D), lambda l, tok: (0, 0)),            # final scale
            pl.BlockSpec((D, VPAD), lambda l, tok: (0, 0)),         # tied LM head
        ],
        out_specs=pl.BlockSpec((bs, VPAD), lambda l, tok: (0, 0)),
        scratch_shapes=[pltpu.VMEM((bs, D), jnp.float32)],          # resident h
    )

    logits_padded = pl.pallas_call(
        _decoder_kernel,
        out_shape=jax.ShapeDtypeStruct((bs, VPAD), jnp.float32),
        grid_spec=grid_spec,
        # Single sequential layer axis -> "arbitrary". No independent grid axis
        # remains (batch is folded into the BS rows), so nothing to mark
        # "parallel" for v7x's dual TensorCores at this size.
        compiler_params=pltpu.CompilerParams(dimension_semantics=("arbitrary",)),
    )(tok_flat, params["emb"], attn_sc, wq, wk, wv, wo, mlp_sc, w1, w3, w2,
      cos_f, sin_f, bias, params["final_scale"], wout_t)

    return logits_padded[:, :V].reshape(Bb, Ss, V)   # (B, S, V) f32


# --------------------------- deterministic init -------------------------------
def init_params(key):
    keys = jax.random.split(key, 1 + NUM_LAYERS)
    std = 0.02
    emb = jax.random.normal(keys[0], (V, D), jnp.float32) * std
    layers = []
    for i in range(NUM_LAYERS):
        k = jax.random.split(keys[1 + i], 7)
        layers.append(dict(
            attn_scale=jnp.ones((1, D), jnp.float32),
            wq=jax.random.normal(k[0], (D, D), jnp.float32) * std,
            wk=jax.random.normal(k[1], (D, D), jnp.float32) * std,
            wv=jax.random.normal(k[2], (D, D), jnp.float32) * std,
            wo=jax.random.normal(k[3], (D, D), jnp.float32) * std,
            mlp_scale=jnp.ones((1, D), jnp.float32),
            w1=jax.random.normal(k[4], (D, F), jnp.float32) * std,
            w3=jax.random.normal(k[5], (D, F), jnp.float32) * std,
            w2=jax.random.normal(k[6], (F, D), jnp.float32) * std,
        ))
    return dict(emb=emb, layers=layers,
                final_scale=jnp.ones((1, D), jnp.float32),
                wout=emb)   # tied_embeddings=True -> output weight = embedding table


# ----------------------------- pure-JAX reference ------------------------------
def reference_forward(tokens, params):
    cos, sin = rope_tables(tokens.shape[1], HD)

    def rms(x, scale):
        ms = jnp.mean(x * x, axis=-1, keepdims=True)
        return x * lax.rsqrt(ms + EPS) * scale

    def rope(x):
        half = HD // 2
        xr = jnp.concatenate([-x[..., half:], x[..., :half]], axis=-1)
        return x * cos + xr * sin

    h = params["emb"][tokens]
    row = jnp.arange(S)[:, None]
    col = jnp.arange(S)[None, :]
    causal = row >= col
    for lp in params["layers"]:
        xn = rms(h, lp["attn_scale"])
        q, k, v = xn @ lp["wq"], xn @ lp["wk"], xn @ lp["wv"]
        outs = []
        for hh in range(H):
            sl = slice(hh * HD, (hh + 1) * HD)
            qh, kh, vh = rope(q[..., sl]), rope(k[..., sl]), v[..., sl]
            sc = jnp.einsum("bqd,bkd->bqk", qh, kh) / (HD ** 0.5)
            sc = jnp.where(causal, sc, NEG_INF)
            p = jax.nn.softmax(sc, axis=-1)
            outs.append(jnp.einsum("bqk,bkd->bqd", p, vh))
        h1 = h + jnp.concatenate(outs, axis=-1) @ lp["wo"]
        xn2 = rms(h1, lp["mlp_scale"])
        h = h1 + (jax.nn.silu(xn2 @ lp["w1"]) * (xn2 @ lp["w3"])) @ lp["w2"]
    hn = rms(h, params["final_scale"])
    return (hn @ params["wout"].T).astype(jnp.float32)


if __name__ == "__main__":
    key = jax.random.PRNGKey(0)
    pkey, tkey = jax.random.split(key)
    params = init_params(pkey)
    tokens = jax.random.randint(tkey, (B, S), 0, V, dtype=jnp.int32)

    logits = jax.block_until_ready(transformer_decoder_forward(tokens, params))
    assert logits.shape == (B, S, V) and logits.dtype == jnp.float32

    ref = reference_forward(tokens, params)
    max_err = float(jnp.max(jnp.abs(logits - ref)))
    # bf16 matmul inputs + EUP approx reciprocals introduce small bounded drift
    # vs the pure-f32 reference; logits are O(0.1-0.4) so 2e-2 abs is tight
    # enough to catch real bugs while tolerating the intended precision change.
    if max_err > 2e-2:
        raise AssertionError(f"Pallas output mismatch vs reference: max abs err {max_err}")

    print("KERNEL_OK")
</pallas_src>

<mosaic_0001>
module attributes {stable_mosaic.version = 11 : i64} {
  func.func @_decoder_kernel(%arg0: i32, %arg1: memref<16xi32, #tpu.memory_space<smem>>, %arg2: memref<64x32xf32, #tpu.memory_space<vmem>>, %arg3: memref<1x1x32xf32, #tpu.memory_space<vmem>>, %arg4: memref<1x32x32xbf16, #tpu.memory_space<vmem>>, %arg5: memref<1x32x32xbf16, #tpu.memory_space<vmem>>, %arg6: memref<1x32x32xbf16, #tpu.memory_space<vmem>>, %arg7: memref<1x32x32xbf16, #tpu.memory_space<vmem>>, %arg8: memref<1x1x32xf32, #tpu.memory_space<vmem>>, %arg9: memref<1x32x64xbf16, #tpu.memory_space<vmem>>, %arg10: memref<1x32x64xbf16, #tpu.memory_space<vmem>>, %arg11: memref<1x64x32xbf16, #tpu.memory_space<vmem>>, %arg12: memref<16x8xf32, #tpu.memory_space<vmem>>, %arg13: memref<16x8xf32, #tpu.memory_space<vmem>>, %arg14: memref<16x16xf32, #tpu.memory_space<vmem>>, %arg15: memref<1x32xf32, #tpu.memory_space<vmem>>, %arg16: memref<32x128xbf16, #tpu.memory_space<vmem>>, %arg17: memref<16x128xf32, #tpu.memory_space<vmem>>, %arg18: memref<16x32xf32, #tpu.memory_space<vmem>>) attributes {dimension_semantics = [#tpu.dimension_semantics<arbitrary>], iteration_bounds = array<i64: 2>, scalar_prefetch = 1 : i64, scratch_operands = 1 : i64, tpu.core_type = #tpu.core_type<tc>, window_params = [{pipeline_mode = #tpu.pipeline_mode<synchronous>, transform_indices = @transform_0, window_bounds = array<i64: 64, 32>}, {transform_indices = @transform_1, window_bounds = array<i64: 1, 1, 32>}, {transform_indices = @transform_2, window_bounds = array<i64: 1, 32, 32>}, {transform_indices = @transform_3, window_bounds = array<i64: 1, 32, 32>}, {transform_indices = @transform_4, window_bounds = array<i64: 1, 32, 32>}, {transform_indices = @transform_5, window_bounds = array<i64: 1, 32, 32>}, {transform_indices = @transform_6, window_bounds = array<i64: 1, 1, 32>}, {transform_indices = @transform_7, window_bounds = array<i64: 1, 32, 64>}, {transform_indices = @transform_8, window_bounds = array<i64: 1, 32, 64>}, {transform_indices = @transform_9, window_bounds = array<i64: 1, 64, 32>}, {pipeline_mode = #tpu.pipeline_mode<synchronous>, transform_indices = @transform_10, window_bounds = array<i64: 16, 8>}, {pipeline_mode = #tpu.pipeline_mode<synchronous>, transform_indices = @transform_11, window_bounds = array<i64: 16, 8>}, {pipeline_mode = #tpu.pipeline_mode<synchronous>, transform_indices = @transform_12, window_bounds = array<i64: 16, 16>}, {pipeline_mode = #tpu.pipeline_mode<synchronous>, transform_indices = @transform_13, window_bounds = array<i64: 1, 32>}, {pipeline_mode = #tpu.pipeline_mode<synchronous>, transform_indices = @transform_14, window_bounds = array<i64: 32, 128>}, {pipeline_mode = #tpu.pipeline_mode<synchronous>, transform_indices = @transform_15, window_bounds = array<i64: 16, 128>}]} {
    %c0_i32 = arith.constant 0 : i32
    %0 = arith.cmpi eq, %arg0, %c0_i32 : i32
    %1 = arith.extui %0 : i1 to i32
    %c0_i32_0 = arith.constant 0 : i32
    %2 = arith.cmpi ne, %1, %c0_i32_0 : i32
    scf.if %2 {
      %c0_59 = arith.constant 0 : index
      %149 = memref.load %arg1[%c0_59] : memref<16xi32, #tpu.memory_space<smem>>
      %150 = arith.index_cast %149 : i32 to index
      %c0_60 = arith.constant 0 : index
      %151 = vector.load %arg2[%150, %c0_60] : memref<64x32xf32, #tpu.memory_space<vmem>>, vector<1x32xf32>
      %c0_61 = arith.constant 0 : index
      %c0_62 = arith.constant 0 : index
      %152 = vector.load %arg18[%c0_61, %c0_62] : memref<16x32xf32, #tpu.memory_space<vmem>>, vector<1x32xf32>
      tpu.vector_store %arg18[%c0_61, %c0_62], %151 {strides = array<i32>} : memref<16x32xf32, #tpu.memory_space<vmem>>, vector<1x32xf32>,
      %c1 = arith.constant 1 : index
      %153 = memref.load %arg1[%c1] : memref<16xi32, #tpu.memory_space<smem>>
      %154 = arith.index_cast %153 : i32 to index
      %c0_63 = arith.constant 0 : index
      %155 = vector.load %arg2[%154, %c0_63] : memref<64x32xf32, #tpu.memory_space<vmem>>, vector<1x32xf32>
      %c1_64 = arith.constant 1 : index
      %c0_65 = arith.constant 0 : index
      %156 = vector.load %arg18[%c1_64, %c0_65] : memref<16x32xf32, #tpu.memory_space<vmem>>, vector<1x32xf32>
      tpu.vector_store %arg18[%c1_64, %c0_65], %155 {strides = array<i32>} : memref<16x32xf32, #tpu.memory_space<vmem>>, vector<1x32xf32>,
      %c2 = arith.constant 2 : index
      %157 = memref.load %arg1[%c2] : memref<16xi32, #tpu.memory_space<smem>>
      %158 = arith.index_cast %157 : i32 to index
      %c0_66 = arith.constant 0 : index
      %159 = vector.load %arg2[%158, %c0_66] : memref<64x32xf32, #tpu.memory_space<vmem>>, vector<1x32xf32>
      %c2_67 = arith.constant 2 : index
      %c0_68 = arith.constant 0 : index
      %160 = vector.load %arg18[%c2_67, %c0_68] : memref<16x32xf32, #tpu.memory_space<vmem>>, vector<1x32xf32>
      tpu.vector_store %arg18[%c2_67, %c0_68], %159 {strides = array<i32>} : memref<16x32xf32, #tpu.memory_space<vmem>>, vector<1x32xf32>,
      %c3 = arith.constant 3 : index
      %161 = memref.load %arg1[%c3] : memref<16xi32, #tpu.memory_space<smem>>
      %162 = arith.index_cast %161 : i32 to index
      %c0_69 = arith.constant 0 : index
      %163 = vector.load %arg2[%162, %c0_69] : memref<64x32xf32, #tpu.memory_space<vmem>>, vector<1x32xf32>
      %c3_70 = arith.constant 3 : index
      %c0_71 = arith.constant 0 : index
      %164 = vector.load %arg18[%c3_70, %c0_71] : memref<16x32xf32, #tpu.memory_space<vmem>>, vector<1x32xf32>
      tpu.vector_store %arg18[%c3_70, %c0_71], %163 {strides = array<i32>} : memref<16x32xf32, #tpu.memory_space<vmem>>, vector<1x32xf32>,
      %c4 = arith.constant 4 : index
      %165 = memref.load %arg1[%c4] : memref<16xi32, #tpu.memory_space<smem>>
      %166 = arith.index_cast %165 : i32 to index
      %c0_72 = arith.constant 0 : index
      %167 = vector.load %arg2[%166, %c0_72] : memref<64x32xf32, #tpu.memory_space<vmem>>, vector<1x32xf32>
      %c4_73 = arith.constant 4 : index
      %c0_74 = arith.constant 0 : index
      %168 = vector.load %arg18[%c4_73, %c0_74] : memref<16x32xf32, #tpu.memory_space<vmem>>, vector<1x32xf32>
      tpu.vector_store %arg18[%c4_73, %c0_74], %167 {strides = array<i32>} : memref<16x32xf32, #tpu.memory_space<vmem>>, vector<1x32xf32>,
      %c5 = arith.constant 5 : index
      %169 = memref.load %arg1[%c5] : memref<16xi32, #tpu.memory_space<smem>>
      %170 = arith.index_cast %169 : i32 to index
      %c0_75 = arith.constant 0 : index
      %171 = vector.load %arg2[%170, %c0_75] : memref<64x32xf32, #tpu.memory_space<vmem>>, vector<1x32xf32>
      %c5_76 = arith.constant 5 : index
      %c0_77 = arith.constant 0 : index
      %172 = vector.load %arg18[%c5_76, %c0_77] : memref<16x32xf32, #tpu.memory_space<vmem>>, vector<1x32xf32>
      tpu.vector_store %arg18[%c5_76, %c0_77], %171 {strides = array<i32>} : memref<16x32xf32, #tpu.memory_space<vmem>>, vector<1x32xf32>,
      %c6 = arith.constant 6 : index
      %173 = memref.load %arg1[%c6] : memref<16xi32, #tpu.memory_space<smem>>
      %174 = arith.index_cast %173 : i32 to index
      %c0_78 = arith.constant 0 : index
      %175 = vector.load %arg2[%174, %c0_78] : memref<64x32xf32, #tpu.memory_space<vmem>>, vector<1x32xf32>
      %c6_79 = arith.constant 6 : index
      %c0_80 = arith.constant 0 : index
      %176 = vector.load %arg18[%c6_79, %c0_80] : memref<16x32xf32, #tpu.memory_space<vmem>>, vector<1x32xf32>
      tpu.vector_store %arg18[%c6_79, %c0_80], %175 {strides = array<i32>} : memref<16x32xf32, #tpu.memory_space<vmem>>, vector<1x32xf32>,
      %c7 = arith.constant 7 : index
      %177 = memref.load %arg1[%c7] : memref<16xi32, #tpu.memory_space<smem>>
      %178 = arith.index_cast %177 : i32 to index
      %c0_81 = arith.constant 0 : index
      %179 = vector.load %arg2[%178, %c0_81] : memref<64x32xf32, #tpu.memory_space<vmem>>, vector<1x32xf32>
      %c7_82 = arith.constant 7 : index
      %c0_83 = arith.constant 0 : index
      %180 = vector.load %arg18[%c7_82, %c0_83] : memref<16x32xf32, #tpu.memory_space<vmem>>, vector<1x32xf32>
      tpu.vector_store %arg18[%c7_82, %c0_83], %179 {strides = array<i32>} : memref<16x32xf32, #tpu.memory_space<vmem>>, vector<1x32xf32>,
      %c8 = arith.constant 8 : index
      %181 = memref.load %arg1[%c8] : memref<16xi32, #tpu.memory_space<smem>>
      %182 = arith.index_cast %181 : i32 to index
      %c0_84 = arith.constant 0 : index
      %183 = vector.load %arg2[%182, %c0_84] : memref<64x32xf32, #tpu.memory_space<vmem>>, vector<1x32xf32>
      %c8_85 = arith.constant 8 : index
      %c0_86 = arith.constant 0 : index
      %184 = vector.load %arg18[%c8_85, %c0_86] : memref<16x32xf32, #tpu.memory_space<vmem>>, vector<1x32xf32>
      tpu.vector_store %arg18[%c8_85, %c0_86], %183 {strides = array<i32>} : memref<16x32xf32, #tpu.memory_space<vmem>>, vector<1x32xf32>,
      %c9 = arith.constant 9 : index
      %185 = memref.load %arg1[%c9] : memref<16xi32, #tpu.memory_space<smem>>
      %186 = arith.index_cast %185 : i32 to index
      %c0_87 = arith.constant 0 : index
      %187 = vector.load %arg2[%186, %c0_87] : memref<64x32xf32, #tpu.memory_space<vmem>>, vector<1x32xf32>
      %c9_88 = arith.constant 9 : index
      %c0_89 = arith.constant 0 : index
      %188 = vector.load %arg18[%c9_88, %c0_89] : memref<16x32xf32, #tpu.memory_space<vmem>>, vector<1x32xf32>
      tpu.vector_store %arg18[%c9_88, %c0_89], %187 {strides = array<i32>} : memref<16x32xf32, #tpu.memory_space<vmem>>, vector<1x32xf32>,
      %c10 = arith.constant 10 : index
      %189 = memref.load %arg1[%c10] : memref<16xi32, #tpu.memory_space<smem>>
      %190 = arith.index_cast %189 : i32 to index
      %c0_90 = arith.constant 0 : index
      %191 = vector.load %arg2[%190, %c0_90] : memref<64x32xf32, #tpu.memory_space<vmem>>, vector<1x32xf32>
      %c10_91 = arith.constant 10 : index
      %c0_92 = arith.constant 0 : index
      %192 = vector.load %arg18[%c10_91, %c0_92] : memref<16x32xf32, #tpu.memory_space<vmem>>, vector<1x32xf32>
      tpu.vector_store %arg18[%c10_91, %c0_92], %191 {strides = array<i32>} : memref<16x32xf32, #tpu.memory_space<vmem>>, vector<1x32xf32>,
      %c11 = arith.constant 11 : index
      %193 = memref.load %arg1[%c11] : memref<16xi32, #tpu.memory_space<smem>>
      %194 = arith.index_cast %193 : i32 to index
      %c0_93 = arith.constant 0 : index
      %195 = vector.load %arg2[%194, %c0_93] : memref<64x32xf32, #tpu.memory_space<vmem>>, vector<1x32xf32>
      %c11_94 = arith.constant 11 : index
      %c0_95 = arith.constant 0 : index
      %196 = vector.load %arg18[%c11_94, %c0_95] : memref<16x32xf32, #tpu.memory_space<vmem>>, vector<1x32xf32>
      tpu.vector_store %arg18[%c11_94, %c0_95], %195 {strides = array<i32>} : memref<16x32xf32, #tpu.memory_space<vmem>>, vector<1x32xf32>,
      %c12 = arith.constant 12 : index
      %197 = memref.load %arg1[%c12] : memref<16xi32, #tpu.memory_space<smem>>
      %198 = arith.index_cast %197 : i32 to index
      %c0_96 = arith.constant 0 : index
      %199 = vector.load %arg2[%198, %c0_96] : memref<64x32xf32, #tpu.memory_space<vmem>>, vector<1x32xf32>
      %c12_97 = arith.constant 12 : index
      %c0_98 = arith.constant 0 : index
      %200 = vector.load %arg18[%c12_97, %c0_98] : memref<16x32xf32, #tpu.memory_space<vmem>>, vector<1x32xf32>
      tpu.vector_store %arg18[%c12_97, %c0_98], %199 {strides = array<i32>} : memref<16x32xf32, #tpu.memory_space<vmem>>, vector<1x32xf32>,
      %c13 = arith.constant 13 : index
      %201 = memref.load %arg1[%c13] : memref<16xi32, #tpu.memory_space<smem>>
      %202 = arith.index_cast %201 : i32 to index
      %c0_99 = arith.constant 0 : index
      %203 = vector.load %arg2[%202, %c0_99] : memref<64x32xf32, #tpu.memory_space<vmem>>, vector<1x32xf32>
      %c13_100 = arith.constant 13 : index
      %c0_101 = arith.constant 0 : index
      %204 = vector.load %arg18[%c13_100, %c0_101] : memref<16x32xf32, #tpu.memory_space<vmem>>, vector<1x32xf32>
      tpu.vector_store %arg18[%c13_100, %c0_101], %203 {strides = array<i32>} : memref<16x32xf32, #tpu.memory_space<vmem>>, vector<1x32xf32>,
      %c14 = arith.constant 14 : index
      %205 = memref.load %arg1[%c14] : memref<16xi32, #tpu.memory_space<smem>>
      %206 = arith.index_cast %205 : i32 to index
      %c0_102 = arith.constant 0 : index
      %207 = vector.load %arg2[%206, %c0_102] : memref<64x32xf32, #tpu.memory_space<vmem>>, vector<1x32xf32>
      %c14_103 = arith.constant 14 : index
      %c0_104 = arith.constant 0 : index
      %208 = vector.load %arg18[%c14_103, %c0_104] : memref<16x32xf32, #tpu.memory_space<vmem>>, vector<1x32xf32>
      tpu.vector_store %arg18[%c14_103, %c0_104], %207 {strides = array<i32>} : memref<16x32xf32, #tpu.memory_space<vmem>>, vector<1x32xf32>,
      %c15 = arith.constant 15 : index
      %209 = memref.load %arg1[%c15] : memref<16xi32, #tpu.memory_space<smem>>
      %210 = arith.index_cast %209 : i32 to index
      %c0_105 = arith.constant 0 : index
      %211 = vector.load %arg2[%210, %c0_105] : memref<64x32xf32, #tpu.memory_space<vmem>>, vector<1x32xf32>
      %c15_106 = arith.constant 15 : index
      %c0_107 = arith.constant 0 : index
      %212 = vector.load %arg18[%c15_106, %c0_107] : memref<16x32xf32, #tpu.memory_space<vmem>>, vector<1x32xf32>
      tpu.vector_store %arg18[%c15_106, %c0_107], %211 {strides = array<i32>} : memref<16x32xf32, #tpu.memory_space<vmem>>, vector<1x32xf32>,
    } else {
    }
    %c0 = arith.constant 0 : index
    %c0_1 = arith.constant 0 : index
    %3 = vector.load %arg18[%c0, %c0_1] : memref<16x32xf32, #tpu.memory_space<vmem>>, vector<16x32xf32>
    %c0_2 = arith.constant 0 : index
    %c0_3 = arith.constant 0 : index
    %c0_4 = arith.constant 0 : index
    %4 = vector.load %arg3[%c0_2, %c0_3, %c0_4] : memref<1x1x32xf32, #tpu.memory_space<vmem>>, vector<1x1x32xf32>
    %5 = vector.shape_cast %4 : vector<1x1x32xf32> to vector<1x32xf32>
    %6 = arith.mulf %3, %3 : vector<16x32xf32>
    %cst = arith.constant dense<0.000000e+00> : vector<16xf32>
    %7 = vector.multi_reduction <add>, %6, %cst [1] : vector<16x32xf32> to vector<16xf32>
    %8 = vector.shape_cast %7 : vector<16xf32> to vector<16x1xf32>
    %cst_5 = arith.constant 3.200000e+01 : f32
    %9 = vector.broadcast %cst_5 : f32 to vector<16x1xf32>
    %10 = arith.divf %8, %9 : vector<16x1xf32>
    %cst_6 = arith.constant 9.99999974E-6 : f32
    %11 = vector.broadcast %cst_6 : f32 to vector<16x1xf32>
    %12 = arith.addf %10, %11 : vector<16x1xf32>
    %13 = math.rsqrt %12 : vector<16x1xf32>
    %14 = vector.broadcast %13 : vector<16x1xf32> to vector<16x32xf32>
    %15 = arith.mulf %3, %14 : vector<16x32xf32>
    %16 = vector.broadcast %5 : vector<1x32xf32> to vector<16x32xf32>
    %17 = arith.mulf %15, %16 : vector<16x32xf32>
    %18 = arith.truncf %17 : vector<16x32xf32> to vector<16x32xbf16>
    %c0_7 = arith.constant 0 : index
    %c0_8 = arith.constant 0 : index
    %c0_9 = arith.constant 0 : index
    %19 = vector.load %arg4[%c0_7, %c0_8, %c0_9] : memref<1x32x32xbf16, #tpu.memory_space<vmem>>, vector<1x32x32xbf16>
    %20 = vector.shape_cast %19 : vector<1x32x32xbf16> to vector<32x32xbf16>
    %cst_10 = arith.constant dense<0.000000e+00> : vector<16x32xf32>
    %21 = tpu.matmul %18, %20, %cst_10 {dimension_numbers = #tpu.dot_dimension_numbers<[1], [0], [0], [1], [0, 0, 1, 1], [], []>} : vector<16x32xbf16>, vector<32x32xbf16>, vector<16x32xf32> -> vector<16x32xf32>
    %c0_11 = arith.constant 0 : index
    %c0_12 = arith.constant 0 : index
    %c0_13 = arith.constant 0 : index
    %22 = vector.load %arg5[%c0_11, %c0_12, %c0_13] : memref<1x32x32xbf16, #tpu.memory_space<vmem>>, vector<1x32x32xbf16>
    %23 = vector.shape_cast %22 : vector<1x32x32xbf16> to vector<32x32xbf16>
    %cst_14 = arith.constant dense<0.000000e+00> : vector<16x32xf32>
    %24 = tpu.matmul %18, %23, %cst_14 {dimension_numbers = #tpu.dot_dimension_numbers<[1], [0], [0], [1], [0, 0, 1, 1], [], []>} : vector<16x32xbf16>, vector<32x32xbf16>, vector<16x32xf32> -> vector<16x32xf32>
    %c0_15 = arith.constant 0 : index
    %c0_16 = arith.constant 0 : index
    %c0_17 = arith.constant 0 : index
    %25 = vector.load %arg6[%c0_15, %c0_16, %c0_17] : memref<1x32x32xbf16, #tpu.memory_space<vmem>>, vector<1x32x32xbf16>
    %26 = vector.shape_cast %25 : vector<1x32x32xbf16> to vector<32x32xbf16>
    %cst_18 = arith.constant dense<0.000000e+00> : vector<16x32xf32>
    %27 = tpu.matmul %18, %26, %cst_18 {dimension_numbers = #tpu.dot_dimension_numbers<[1], [0], [0], [1], [0, 0, 1, 1], [], []>} : vector<16x32xbf16>, vector<32x32xbf16>, vector<16x32xf32> -> vector<16x32xf32>
    %c0_19 = arith.constant 0 : index
    %c0_20 = arith.constant 0 : index
    %28 = vector.load %arg12[%c0_19, %c0_20] : memref<16x8xf32, #tpu.memory_space<vmem>>, vector<16x8xf32>
    %29 = vector.shape_cast %28 : vector<16x8xf32> to vector<1x16x8xf32>
    %c0_21 = arith.constant 0 : index
    %c0_22 = arith.constant 0 : index
    %30 = vector.load %arg13[%c0_21, %c0_22] : memref<16x8xf32, #tpu.memory_space<vmem>>, vector<16x8xf32>
    %31 = vector.shape_cast %30 : vector<16x8xf32> to vector<1x16x8xf32>
    %32 = vector.extract_strided_slice %21 {offsets = [0, 0], sizes = [16, 8], strides = [1, 1]} : vector<16x32xf32> to vector<16x8xf32>
    %33 = vector.extract_strided_slice %21 {offsets = [0, 8], sizes = [16, 8], strides = [1, 1]} : vector<16x32xf32> to vector<16x8xf32>
    %34 = vector.extract_strided_slice %21 {offsets = [0, 16], sizes = [16, 8], strides = [1, 1]} : vector<16x32xf32> to vector<16x8xf32>
    %35 = vector.extract_strided_slice %21 {offsets = [0, 24], sizes = [16, 8], strides = [1, 1]} : vector<16x32xf32> to vector<16x8xf32>
    %36 = vector.shape_cast %32 : vector<16x8xf32> to vector<1x16x8xf32>
    %37 = vector.shape_cast %33 : vector<16x8xf32> to vector<1x16x8xf32>
    %38 = vector.shape_cast %34 : vector<16x8xf32> to vector<1x16x8xf32>
    %39 = vector.shape_cast %35 : vector<16x8xf32> to vector<1x16x8xf32>
    %40 = tpu.concatenate %36, %37, %38, %39 in 0 : vector<1x16x8xf32>, vector<1x16x8xf32>, vector<1x16x8xf32>, vector<1x16x8xf32> -> vector<4x16x8xf32>
    %41 = vector.extract_strided_slice %40 {offsets = [0, 0, 4], sizes = [4, 16, 4], strides = [1, 1, 1]} : vector<4x16x8xf32> to vector<4x16x4xf32>
    %cst_23 = arith.constant 0.000000e+00 : f32
    %42 = vector.broadcast %cst_23 : f32 to vector<4x16x4xf32>
    %43 = arith.subf %42, %41 : vector<4x16x4xf32>
    %44 = vector.extract_strided_slice %40 {offsets = [0, 0, 0], sizes = [4, 16, 4], strides = [1, 1, 1]} : vector<4x16x8xf32> to vector<4x16x4xf32>
    %45 = tpu.concatenate %43, %44 in 2 : vector<4x16x4xf32>, vector<4x16x4xf32> -> vector<4x16x8xf32>
    %46 = vector.broadcast %29 : vector<1x16x8xf32> to vector<4x16x8xf32>
    %47 = arith.mulf %40, %46 : vector<4x16x8xf32>
    %48 = vector.broadcast %31 : vector<1x16x8xf32> to vector<4x16x8xf32>
    %49 = arith.mulf %45, %48 : vector<4x16x8xf32>
    %50 = arith.addf %47, %49 : vector<4x16x8xf32>
    %51 = vector.extract_strided_slice %24 {offsets = [0, 0], sizes = [16, 8], strides = [1, 1]} : vector<16x32xf32> to vector<16x8xf32>
    %52 = vector.extract_strided_slice %24 {offsets = [0, 8], sizes = [16, 8], strides = [1, 1]} : vector<16x32xf32> to vector<16x8xf32>
    %53 = vector.extract_strided_slice %24 {offsets = [0, 16], sizes = [16, 8], strides = [1, 1]} : vector<16x32xf32> to vector<16x8xf32>
    %54 = vector.extract_strided_slice %24 {offsets = [0, 24], sizes = [16, 8], strides = [1, 1]} : vector<16x32xf32> to vector<16x8xf32>
    %55 = vector.shape_cast %51 : vector<16x8xf32> to vector<1x16x8xf32>
    %56 = vector.shape_cast %52 : vector<16x8xf32> to vector<1x16x8xf32>
    %57 = vector.shape_cast %53 : vector<16x8xf32> to vector<1x16x8xf32>
    %58 = vector.shape_cast %54 : vector<16x8xf32> to vector<1x16x8xf32>
    %59 = tpu.concatenate %55, %56, %57, %58 in 0 : vector<1x16x8xf32>, vector<1x16x8xf32>, vector<1x16x8xf32>, vector<1x16x8xf32> -> vector<4x16x8xf32>
    %60 = vector.extract_strided_slice %59 {offsets = [0, 0, 4], sizes = [4, 16, 4], strides = [1, 1, 1]} : vector<4x16x8xf32> to vector<4x16x4xf32>
    %cst_24 = arith.constant 0.000000e+00 : f32
    %61 = vector.broadcast %cst_24 : f32 to vector<4x16x4xf32>
    %62 = arith.subf %61, %60 : vector<4x16x4xf32>
    %63 = vector.extract_strided_slice %59 {offsets = [0, 0, 0], sizes = [4, 16, 4], strides = [1, 1, 1]} : vector<4x16x8xf32> to vector<4x16x4xf32>
    %64 = tpu.concatenate %62, %63 in 2 : vector<4x16x4xf32>, vector<4x16x4xf32> -> vector<4x16x8xf32>
    %65 = vector.broadcast %29 : vector<1x16x8xf32> to vector<4x16x8xf32>
    %66 = arith.mulf %59, %65 : vector<4x16x8xf32>
    %67 = vector.broadcast %31 : vector<1x16x8xf32> to vector<4x16x8xf32>
    %68 = arith.mulf %64, %67 : vector<4x16x8xf32>
    %69 = arith.addf %66, %68 : vector<4x16x8xf32>
    %70 = vector.extract_strided_slice %27 {offsets = [0, 0], sizes = [16, 8], strides = [1, 1]} : vector<16x32xf32> to vector<16x8xf32>
    %71 = vector.extract_strided_slice %27 {offsets = [0, 8], sizes = [16, 8], strides = [1, 1]} : vector<16x32xf32> to vector<16x8xf32>
    %72 = vector.extract_strided_slice %27 {offsets = [0, 16], sizes = [16, 8], strides = [1, 1]} : vector<16x32xf32> to vector<16x8xf32>
    %73 = vector.extract_strided_slice %27 {offsets = [0, 24], sizes = [16, 8], strides = [1, 1]} : vector<16x32xf32> to vector<16x8xf32>
    %74 = vector.shape_cast %70 : vector<16x8xf32> to vector<1x16x8xf32>
    %75 = vector.shape_cast %71 : vector<16x8xf32> to vector<1x16x8xf32>
    %76 = vector.shape_cast %72 : vector<16x8xf32> to vector<1x16x8xf32>
    %77 = vector.shape_cast %73 : vector<16x8xf32> to vector<1x16x8xf32>
    %78 = tpu.concatenate %74, %75, %76, %77 in 0 : vector<1x16x8xf32>, vector<1x16x8xf32>, vector<1x16x8xf32>, vector<1x16x8xf32> -> vector<4x16x8xf32>
    "tpu.trace_start"() <{level = 10 : i32, message = "hqd,hkd->hqk"}> : () -> ()
    %cst_25 = arith.constant dense<0.000000e+00> : vector<4x16x16xf32>
    %79 = tpu.matmul %50, %69, %cst_25 {dimension_numbers = #tpu.dot_dimension_numbers<[2], [2], [1], [1], [0, 0, 0, 1, 1, 1], [0], [0]>} : vector<4x16x8xf32>, vector<4x16x8xf32>, vector<4x16x16xf32> -> vector<4x16x16xf32>
    "tpu.trace_stop"() : () -> ()
    %cst_26 = arith.constant 0.353553385 : f32
    %80 = vector.broadcast %cst_26 : f32 to vector<4x16x16xf32>
    %81 = arith.mulf %79, %80 : vector<4x16x16xf32>
    %c0_27 = arith.constant 0 : index
    %c0_28 = arith.constant 0 : index
    %82 = vector.load %arg14[%c0_27, %c0_28] : memref<16x16xf32, #tpu.memory_space<vmem>>, vector<16x16xf32>
    %83 = vector.shape_cast %82 : vector<16x16xf32> to vector<1x16x16xf32>
    %84 = vector.broadcast %83 : vector<1x16x16xf32> to vector<4x16x16xf32>
    %85 = arith.addf %81, %84 : vector<4x16x16xf32>
    %cst_29 = arith.constant dense<0xFF800000> : vector<4x16xf32>
    %86 = vector.multi_reduction <maximumf>, %85, %cst_29 [2] : vector<4x16x16xf32> to vector<4x16xf32>
    %87 = vector.shape_cast %86 : vector<4x16xf32> to vector<4x16x1xf32>
    %88 = vector.broadcast %87 : vector<4x16x1xf32> to vector<4x16x16xf32>
    %89 = arith.subf %85, %88 : vector<4x16x16xf32>
    %90 = math.exp %89 : vector<4x16x16xf32>
    %cst_30 = arith.constant dense<0.000000e+00> : vector<4x16xf32>
    %91 = vector.multi_reduction <add>, %90, %cst_30 [2] : vector<4x16x16xf32> to vector<4x16xf32>
    %92 = vector.shape_cast %91 : vector<4x16xf32> to vector<4x16x1xf32>
    %93 = tpu.reciprocal %92 {approx = true} : vector<4x16x1xf32> -> vector<4x16x1xf32>
    %94 = vector.broadcast %93 : vector<4x16x1xf32> to vector<4x16x16xf32>
    %95 = arith.mulf %90, %94 : vector<4x16x16xf32>
    "tpu.trace_start"() <{level = 10 : i32, message = "hqk,hkd->hqd"}> : () -> ()
    %cst_31 = arith.constant dense<0.000000e+00> : vector<4x16x8xf32>
    %96 = tpu.matmul %95, %78, %cst_31 {dimension_numbers = #tpu.dot_dimension_numbers<[2], [1], [1], [2], [0, 0, 0, 1, 1, 2], [0], [0]>} : vector<4x16x16xf32>, vector<4x16x8xf32>, vector<4x16x8xf32> -> vector<4x16x8xf32>
    "tpu.trace_stop"() : () -> ()
    %97 = vector.extract_strided_slice %96 {offsets = [0, 0, 0], sizes = [1, 16, 8], strides = [1, 1, 1]} : vector<4x16x8xf32> to vector<1x16x8xf32>
    %98 = vector.shape_cast %97 : vector<1x16x8xf32> to vector<16x8xf32>
    %99 = vector.extract_strided_slice %96 {offsets = [1, 0, 0], sizes = [1, 16, 8], strides = [1, 1, 1]} : vector<4x16x8xf32> to vector<1x16x8xf32>
    %100 = vector.shape_cast %99 : vector<1x16x8xf32> to vector<16x8xf32>
    %101 = vector.extract_strided_slice %96 {offsets = [2, 0, 0], sizes = [1, 16, 8], strides = [1, 1, 1]} : vector<4x16x8xf32> to vector<1x16x8xf32>
    %102 = vector.shape_cast %101 : vector<1x16x8xf32> to vector<16x8xf32>
    %103 = vector.extract_strided_slice %96 {offsets = [3, 0, 0], sizes = [1, 16, 8], strides = [1, 1, 1]} : vector<4x16x8xf32> to vector<1x16x8xf32>
    %104 = vector.shape_cast %103 : vector<1x16x8xf32> to vector<16x8xf32>
    %105 = tpu.concatenate %98, %100, %102, %104 in 1 : vector<16x8xf32>, vector<16x8xf32>, vector<16x8xf32>, vector<16x8xf32> -> vector<16x32xf32>
    %106 = arith.truncf %105 : vector<16x32xf32> to vector<16x32xbf16>
    %c0_32 = arith.constant 0 : index
    %c0_33 = arith.constant 0 : index
    %c0_34 = arith.constant 0 : index
    %107 = vector.load %arg7[%c0_32, %c0_33, %c0_34] : memref<1x32x32xbf16, #tpu.memory_space<vmem>>, vector<1x32x32xbf16>
    %108 = vector.shape_cast %107 : vector<1x32x32xbf16> to vector<32x32xbf16>
    %cst_35 = arith.constant dense<0.000000e+00> : vector<16x32xf32>
    %109 = tpu.matmul %106, %108, %cst_35 {dimension_numbers = #tpu.dot_dimension_numbers<[1], [0], [0], [1], [0, 0, 1, 1], [], []>} : vector<16x32xbf16>, vector<32x32xbf16>, vector<16x32xf32> -> vector<16x32xf32>
    %110 = arith.addf %3, %109 : vector<16x32xf32>
    %c0_36 = arith.constant 0 : index
    %c0_37 = arith.constant 0 : index
    %c0_38 = arith.constant 0 : index
    %111 = vector.load %arg8[%c0_36, %c0_37, %c0_38] : memref<1x1x32xf32, #tpu.memory_space<vmem>>, vector<1x1x32xf32>
    %112 = vector.shape_cast %111 : vector<1x1x32xf32> to vector<1x32xf32>
    %113 = arith.mulf %110, %110 : vector<16x32xf32>
    %cst_39 = arith.constant dense<0.000000e+00> : vector<16xf32>
    %114 = vector.multi_reduction <add>, %113, %cst_39 [1] : vector<16x32xf32> to vector<16xf32>
    %115 = vector.shape_cast %114 : vector<16xf32> to vector<16x1xf32>
    %cst_40 = arith.constant 3.200000e+01 : f32
    %116 = vector.broadcast %cst_40 : f32 to vector<16x1xf32>
    %117 = arith.divf %115, %116 : vector<16x1xf32>
    %cst_41 = arith.constant 9.99999974E-6 : f32
    %118 = vector.broadcast %cst_41 : f32 to vector<16x1xf32>
    %119 = arith.addf %117, %118 : vector<16x1xf32>
    %120 = math.rsqrt %119 : vector<16x1xf32>
    %121 = vector.broadcast %120 : vector<16x1xf32> to vector<16x32xf32>
    %122 = arith.mulf %110, %121 : vector<16x32xf32>
    %123 = vector.broadcast %112 : vector<1x32xf32> to vector<16x32xf32>
    %124 = arith.mulf %122, %123 : vector<16x32xf32>
    %125 = arith.truncf %124 : vector<16x32xf32> to vector<16x32xbf16>
    %c0_42 = arith.constant 0 : index
    %c0_43 = arith.constant 0 : index
    %c0_44 = arith.constant 0 : index
    %126 = vector.load %arg9[%c0_42, %c0_43, %c0_44] : memref<1x32x64xbf16, #tpu.memory_space<vmem>>, vector<1x32x64xbf16>
    %127 = vector.shape_cast %126 : vector<1x32x64xbf16> to vector<32x64xbf16>
    %cst_45 = arith.constant dense<0.000000e+00> : vector<16x64xf32>
    %128 = tpu.matmul %125, %127, %cst_45 {dimension_numbers = #tpu.dot_dimension_numbers<[1], [0], [0], [1], [0, 0, 1, 1], [], []>} : vector<16x32xbf16>, vector<32x64xbf16>, vector<16x64xf32> -> vector<16x64xf32>
    %c0_46 = arith.constant 0 : index
    %c0_47 = arith.constant 0 : index
    %c0_48 = arith.constant 0 : index
    %129 = vector.load %arg10[%c0_46, %c0_47, %c0_48] : memref<1x32x64xbf16, #tpu.memory_space<vmem>>, vector<1x32x64xbf16>
    %130 = vector.shape_cast %129 : vector<1x32x64xbf16> to vector<32x64xbf16>
    %cst_49 = arith.constant dense<0.000000e+00> : vector<16x64xf32>
    %131 = tpu.matmul %125, %130, %cst_49 {dimension_numbers = #tpu.dot_dimension_numbers<[1], [0], [0], [1], [0, 0, 1, 1], [], []>} : vector<16x32xbf16>, vector<32x64xbf16>, vector<16x64xf32> -> vector<16x64xf32>
    %cst_50 = arith.constant 0.000000e+00 : f32
    %132 = vector.broadcast %cst_50 : f32 to vector<16x64xf32>
    %133 = arith.subf %132, %128 : vector<16x64xf32>
    %134 = math.exp %133 : vector<16x64xf32>
    %cst_51 = arith.constant 1.000000e+00 : f32
    %135 = vector.broadcast %cst_51 : f32 to vector<16x64xf32>
    %136 = arith.addf %135, %134 : vector<16x64xf32>
    %137 = tpu.reciprocal %136 {approx = true} : vector<16x64xf32> -> vector<16x64xf32>
    %138 = arith.mulf %128, %137 : vector<16x64xf32>
    %139 = arith.mulf %138, %131 : vector<16x64xf32>
    %140 = arith.truncf %139 : vector<16x64xf32> to vector<16x64xbf16>
    %c0_52 = arith.constant 0 : index
    %c0_53 = arith.constant 0 : index
    %c0_54 = arith.constant 0 : index
    %141 = vector.load %arg11[%c0_52, %c0_53, %c0_54] : memref<1x64x32xbf16, #tpu.memory_space<vmem>>, vector<1x64x32xbf16>
    %142 = vector.shape_cast %141 : vector<1x64x32xbf16> to vector<64x32xbf16>
    %cst_55 = arith.constant dense<0.000000e+00> : vector<16x32xf32>
    %143 = tpu.matmul %140, %142, %cst_55 {dimension_numbers = #tpu.dot_dimension_numbers<[1], [0], [0], [1], [0, 0, 1, 1], [], []>} : vector<16x64xbf16>, vector<64x32xbf16>, vector<16x32xf32> -> vector<16x32xf32>
    %144 = arith.addf %110, %143 : vector<16x32xf32>
    %c0_56 = arith.constant 0 : index
    %c0_57 = arith.constant 0 : index
    %145 = vector.load %arg18[%c0_56, %c0_57] : memref<16x32xf32, #tpu.memory_space<vmem>>, vector<16x32xf32>
    tpu.vector_store %arg18[%c0_56, %c0_57], %144 {strides = array<i32>} : memref<16x32xf32, #tpu.memory_space<vmem>>, vector<16x32xf32>,
    %c1_i32 = arith.constant 1 : i32
    %146 = arith.cmpi eq, %arg0, %c1_i32 : i32
    %147 = arith.extui %146 : i1 to i32
    %c0_i32_58 = arith.constant 0 : i32
    %148 = arith.cmpi ne, %147, %c0_i32_58 : i32
    scf.if %148 {
      %c0_59 = arith.constant 0 : index
      %c0_60 = arith.constant 0 : index
      %149 = vector.load %arg15[%c0_59, %c0_60] : memref<1x32xf32, #tpu.memory_space<vmem>>, vector<1x32xf32>
      %150 = arith.mulf %144, %144 : vector<16x32xf32>
      %cst_61 = arith.constant dense<0.000000e+00> : vector<16xf32>
      %151 = vector.multi_reduction <add>, %150, %cst_61 [1] : vector<16x32xf32> to vector<16xf32>
      %152 = vector.shape_cast %151 : vector<16xf32> to vector<16x1xf32>
      %cst_62 = arith.constant 3.200000e+01 : f32
      %153 = vector.broadcast %cst_62 : f32 to vector<16x1xf32>
      %154 = arith.divf %152, %153 : vector<16x1xf32>
      %cst_63 = arith.constant 9.99999974E-6 : f32
      %155 = vector.broadcast %cst_63 : f32 to vector<16x1xf32>
      %156 = arith.addf %154, %155 : vector<16x1xf32>
      %157 = math.rsqrt %156 : vector<16x1xf32>
      %158 = vector.broadcast %157 : vector<16x1xf32> to vector<16x32xf32>
      %159 = arith.mulf %144, %158 : vector<16x32xf32>
      %160 = vector.broadcast %149 : vector<1x32xf32> to vector<16x32xf32>
      %161 = arith.mulf %159, %160 : vector<16x32xf32>
      %162 = arith.truncf %161 : vector<16x32xf32> to vector<16x32xbf16>
      %c0_64 = arith.constant 0 : index
      %c0_65 = arith.constant 0 : index
      %163 = vector.load %arg16[%c0_64, %c0_65] : memref<32x128xbf16, #tpu.memory_space<vmem>>, vector<32x128xbf16>
      %cst_66 = arith.constant dense<0.000000e+00> : vector<16x128xf32>
      %164 = tpu.matmul %162, %163, %cst_66 {dimension_numbers = #tpu.dot_dimension_numbers<[1], [0], [0], [1], [0, 0, 1, 1], [], []>} : vector<16x32xbf16>, vector<32x128xbf16>, vector<16x128xf32> -> vector<16x128xf32>
      %c0_67 = arith.constant 0 : index
      %c0_68 = arith.constant 0 : index
      %165 = vector.load %arg17[%c0_67, %c0_68] : memref<16x128xf32, #tpu.memory_space<vmem>>, vector<16x128xf32>
      tpu.vector_store %arg17[%c0_67, %c0_68], %164 {strides = array<i32>} : memref<16x128xf32, #tpu.memory_space<vmem>>, vector<16x128xf32>,
    } else {
    }
    return
  }
  func.func @transform_0(%arg0: i32, %arg1: memref<16xi32, #tpu.memory_space<smem>>) -> (i32, i32) {
    %c0_i32 = arith.constant 0 : i32
    %c0_i32_0 = arith.constant 0 : i32
    %c0_i32_1 = arith.constant 0 : i32
    return %c0_i32, %c0_i32_0 : i32, i32
  }
  func.func @transform_1(%arg0: i32, %arg1: memref<16xi32, #tpu.memory_space<smem>>) -> (i32, i32, i32) {
    %c0_i32 = arith.constant 0 : i32
    %c0_i32_0 = arith.constant 0 : i32
    %c0_i32_1 = arith.constant 0 : i32
    return %arg0, %c0_i32, %c0_i32_0 : i32, i32, i32
  }
  func.func @transform_2(%arg0: i32, %arg1: memref<16xi32, #tpu.memory_space<smem>>) -> (i32, i32, i32) {
    %c0_i32 = arith.constant 0 : i32
    %c0_i32_0 = arith.constant 0 : i32
    %c0_i32_1 = arith.constant 0 : i32
    return %arg0, %c0_i32, %c0_i32_0 : i32, i32, i32
  }
  func.func @transform_3(%arg0: i32, %arg1: memref<16xi32, #tpu.memory_space<smem>>) -> (i32, i32, i32) {
    %c0_i32 = arith.constant 0 : i32
    %c0_i32_0 = arith.constant 0 : i32
    %c0_i32_1 = arith.constant 0 : i32
    return %arg0, %c0_i32, %c0_i32_0 : i32, i32, i32
  }
  func.func @transform_4(%arg0: i32, %arg1: memref<16xi32, #tpu.memory_space<smem>>) -> (i32, i32, i32) {
    %c0_i32 = arith.constant 0 : i32
    %c0_i32_0 = arith.constant 0 : i32
    %c0_i32_1 = arith.constant 0 : i32
    return %arg0, %c0_i32, %c0_i32_0 : i32, i32, i32
  }
  func.func @transform_5(%arg0: i32, %arg1: memref<16xi32, #tpu.memory_space<smem>>) -> (i32, i32, i32) {
    %c0_i32 = arith.constant 0 : i32
    %c0_i32_0 = arith.constant 0 : i32
    %c0_i32_1 = arith.constant 0 : i32
    return %arg0, %c0_i32, %c0_i32_0 : i32, i32, i32
  }
  func.func @transform_6(%arg0: i32, %arg1: memref<16xi32, #tpu.memory_space<smem>>) -> (i32, i32, i32) {
    %c0_i32 = arith.constant 0 : i32
    %c0_i32_0 = arith.constant 0 : i32
    %c0_i32_1 = arith.constant 0 : i32
    return %arg0, %c0_i32, %c0_i32_0 : i32, i32, i32
  }
  func.func @transform_7(%arg0: i32, %arg1: memref<16xi32, #tpu.memory_space<smem>>) -> (i32, i32, i32) {
    %c0_i32 = arith.constant 0 : i32
    %c0_i32_0 = arith.constant 0 : i32
    %c0_i32_1 = arith.constant 0 : i32
    return %arg0, %c0_i32, %c0_i32_0 : i32, i32, i32
  }
  func.func @transform_8(%arg0: i32, %arg1: memref<16xi32, #tpu.memory_space<smem>>) -> (i32, i32, i32) {
    %c0_i32 = arith.constant 0 : i32
    %c0_i32_0 = arith.constant 0 : i32
    %c0_i32_1 = arith.constant 0 : i32
    return %arg0, %c0_i32, %c0_i32_0 : i32, i32, i32
  }
  func.func @transform_9(%arg0: i32, %arg1: memref<16xi32, #tpu.memory_space<smem>>) -> (i32, i32, i32) {
    %c0_i32 = arith.constant 0 : i32
    %c0_i32_0 = arith.constant 0 : i32
    %c0_i32_1 = arith.constant 0 : i32
    return %arg0, %c0_i32, %c0_i32_0 : i32, i32, i32
  }
  func.func @transform_10(%arg0: i32, %arg1: memref<16xi32, #tpu.memory_space<smem>>) -> (i32, i32) {
    %c0_i32 = arith.constant 0 : i32
    %c0_i32_0 = arith.constant 0 : i32
    %c0_i32_1 = arith.constant 0 : i32
    return %c0_i32, %c0_i32_0 : i32, i32
  }
  func.func @transform_11(%arg0: i32, %arg1: memref<16xi32, #tpu.memory_space<smem>>) -> (i32, i32) {
    %c0_i32 = arith.constant 0 : i32
    %c0_i32_0 = arith.constant 0 : i32
    %c0_i32_1 = arith.constant 0 : i32
    return %c0_i32, %c0_i32_0 : i32, i32
  }
  func.func @transform_12(%arg0: i32, %arg1: memref<16xi32, #tpu.memory_space<smem>>) -> (i32, i32) {
    %c0_i32 = arith.constant 0 : i32
    %c0_i32_0 = arith.constant 0 : i32
    %c0_i32_1 = arith.constant 0 : i32
    return %c0_i32, %c0_i32_0 : i32, i32
  }
  func.func @transform_13(%arg0: i32, %arg1: memref<16xi32, #tpu.memory_space<smem>>) -> (i32, i32) {
    %c0_i32 = arith.constant 0 : i32
    %c0_i32_0 = arith.constant 0 : i32
    %c0_i32_1 = arith.constant 0 : i32
    return %c0_i32, %c0_i32_0 : i32, i32
  }
  func.func @transform_14(%arg0: i32, %arg1: memref<16xi32, #tpu.memory_space<smem>>) -> (i32, i32) {
    %c0_i32 = arith.constant 0 : i32
    %c0_i32_0 = arith.constant 0 : i32
    %c0_i32_1 = arith.constant 0 : i32
    return %c0_i32, %c0_i32_0 : i32, i32
  }
  func.func @transform_15(%arg0: i32, %arg1: memref<16xi32, #tpu.memory_space<smem>>) -> (i32, i32) {
    %c0_i32 = arith.constant 0 : i32
    %c0_i32_0 = arith.constant 0 : i32
    %c0_i32_1 = arith.constant 0 : i32
    return %c0_i32, %c0_i32_0 : i32, i32
  }
}

</mosaic_0001>

<bundles_post_ra>
// kernel: transformer_decoder_forward.1
= control target key start
LH: loop header
LB: loop body
LE: loop exit
PB: predicated region body
PF: predicated region fallthrough
CT: control target
= control target key end

     0   :  { %s3606_s0 = inlined_call_operand.vmem [shape: s32[16], index: 0, kind: input, shape index: {}]   ;;  %s3607_s1 = inlined_call_operand.vmem [shape: f32[64,32], index: 1, kind: input, shape index: {}]   ;;  %s3608_s2 = inlined_call_operand.vmem [shape: f32[2,1,32], index: 2, kind: input, shape index: {}]   ;;  %s3609_s3 = inlined_call_operand.vmem [shape: bf16[2,32,32], index: 3, kind: input, shape index: {}]   ;;  %s3610_s4 = inlined_call_operand.vmem [shape: bf16[2,32,32], index: 4, kind: input, shape index: {}]   ;;  %s3611_s5 = inlined_call_operand.vmem [shape: bf16[2,32,32], index: 5, kind: input, shape index: {}]   ;;  %s3612_s6 = inlined_call_operand.vmem [shape: bf16[2,32,32], index: 6, kind: input, shape index: {}]   ;;  %s3613_s7 = inlined_call_operand.vmem [shape: f32[2,1,32], index: 7, kind: input, shape index: {}]   ;;  %s3614_s8 = inlined_call_operand.vmem [shape: bf16[2,32,64], index: 8, kind: input, shape index: {}]   ;;  %s3615_s9 = inlined_call_operand.vmem [shape: bf16[2,32,64], index: 9, kind: input, shape index: {}]   ;;  %s3616_s10 = inlined_call_operand.vmem [shape: bf16[2,64,32], index: 10, kind: input, shape index: {}]   ;;  %s3617_s11 = inlined_call_operand.vmem [shape: f32[16,8], index: 11, kind: input, shape index: {}]   ;;  %s3618_s12 = inlined_call_operand.vmem [shape: f32[16,8], index: 12, kind: input, shape index: {}]   ;;  %s3619_s13 = inlined_call_operand.vmem [shape: f32[16,16], index: 13, kind: input, shape index: {}]   ;;  %s3620_s14 = inlined_call_operand.vmem [shape: f32[1,32], index: 14, kind: input, shape index: {}]   ;;  %s3621_s15 = inlined_call_operand.vmem [shape: bf16[32,128], index: 15, kind: input, shape index: {}]   ;;  %s3622_s16 = inlined_call_operand.vmem [shape: f32[16,128], index: 16, kind: output, shape index: {}]  }
   0x1   :  { %3634 = sst [smem:[#allocation12_spill]] %s3606_s0 }
   0x2   :  { %3635 = sst [smem:[#allocation13_spill]] %s3607_s1  ;;  %s3649_s23 = sld [smem:[#allocation12_spill]] }
   0x3   :  { %3636 = sst [smem:[#allocation14_spill]] %s3609_s3 }
   0x4   :  { %3637 = sst [smem:[#allocation15_spill]] %s3610_s4 }
   0x5   :  { %3638 = sst [smem:[#allocation16_spill]] %s3611_s5 }
   0x6   :  { %3639 = sst [smem:[#allocation17_spill]] %s3612_s6 }
   0x7   :  { %3640 = sst [smem:[#allocation18_spill]] %s3613_s7 }
   0x8   :  { %3641 = sst [smem:[#allocation19_spill]] %s3614_s8  ;;  %s21_s1 = sshll.u32 %s3649_s23, 4  ;;  %s22_s1 = int_to_ptr.vmem [resolvable:$true] %s21_s1 }
   0x9   :  { %3642 = sst [smem:[#allocation20_spill]] %s3615_s9  ;;  %s2945_s24 = scalar_lea.vmem %s22_s1, 16 }
   0xa   :  { %3643 = sst [smem:[#allocation21_spill]] %s3616_s10  ;;  %p2946_p0 = scmp.ne.s32.totalorder %s22_s1, %s2945_s24 }
   0xb   :  { %3644 = sst [smem:[#allocation22_spill]] %s3617_s11  ;;  %p2950_p1 = scmp.lt.s32.totalorder %s22_s1, %s22_s1 }
   0xc   :  { %3645 = sst [smem:[#allocation23_spill]] %s3619_s13  ;;  %p2951_p2 = scmp.lt.s32.totalorder %s2945_s24, %s2945_s24 }
   0xd   :  { %3646 = sst [smem:[#allocation24_spill]] %s3620_s14 }
   0xe   :  { %3647 = sst [smem:[#allocation25_spill]] %s3621_s15  ;;  %p2952_p3 = por %p2951_p2, %p2950_p1 }
   0xf   :  { %3648 = sst [smem:[#allocation26_spill]] %s3622_s16 }
  0x10   :  { %p2953_p4 = pnand %p2952_p3, %p2946_p0 }
  0x12   :  { %2956 = shalt.err (!%p2953_p4)  }
  0x13   :  { %s2967_s25 = smov [#allocation4]  }
  0x14   :  { %24 = dma.vmem_to_smem %s22_s1, 16, %s2967_s25, [#allocation3] }
  0x15   :  { %2961 = dma.done.wait [#allocation3], 16 }
  0x16   :  { %2962 = vsyncadd [#allocation3], 4294967280 }
  0x17   :  { %26 = sfence }
  0x18   :  { %s3068_s26 = smov 0  }
  0x19 LB: > { %3650 = sst [smem:[#allocation6_spill]] %s2965_s26  ;;  %s3074_s27 = sadd.s32 4294967295, %s2965_s26   ;;  %s2965_s26 = sphi %s3068_s26, %s32_s26  }
  0x1a   : > { %3651 = sst [smem:[#allocation7_spill]] %s3074_s27  ;;  %p2508_p5 = scmp.ge.s32.totalorder %s2965_s26, 1 }
  0x1b   : > { %p515_p6 = scmp.lt.s32.totalorder %s2965_s26, 3 }
  0x1d   : > { %p516_p7 = pnand %p2508_p5, %p515_p6 }
  0x1f   : > { %519 = sbr.rel (%p516_p7) target bundleno = 2854 (0xb26), region = 80 }
  0x26   : > { %p594_p8 = scmp.lt.s32.totalorder %s3074_s27, 1  ;;  %s3652_s3 = sld [smem:[#allocation14_spill]] }
  0x27   : > { %s3653_s4 = sld [smem:[#allocation15_spill]]  ;;  %s3654_s5 = sld [smem:[#allocation16_spill]] }
  0x28   : > { %s3080_s1 = scalar_select %p594_p8, %s3074_s27, 1 }
  0x29   : > { %s3655_s6 = sld [smem:[#allocation17_spill]]  ;;  %s3658_s8 = sld [smem:[#allocation19_spill]] }
  0x2a   : > { %s2595_s0 = sshll.u32 %s3080_s1, 4  ;;  %s3660_s9 = sld [smem:[#allocation20_spill]] }
  0x2b   : > { %s2601_s24 = sshll.u32 %s3080_s1, 5  ;;  %s3662_s10 = sld [smem:[#allocation21_spill]] }
  0x2c   : > { %s3090_s19 = scalar_lea.vmem %s3652_s3, %s2595_s0  ;;  %p2523_p9 = scmp.ne.s32.totalorder %s3074_s27, 0 }
  0x2d   : > { %s3095_s22 = scalar_lea.vmem %s3653_s4, %s2595_s0  ;;  %s3100_s25 = scalar_lea.vmem %s3654_s5, %s2595_s0  ;;  %vm643_vm0 = vcmask (!%p2523_p9), 253952  }
  0x2e   : > { %639 = sbr.rel (%p2523_p9) target bundleno = 80 (0x50), region = 84  ;;  %s640_s16 = sld [smem:[#allocation4]] (!%p2523_p9) }
  0x2f   : > { %s3105_s30 = scalar_lea.vmem %s3655_s6, %s2595_s0  ;;  %s3114_s20 = scalar_lea.vmem %s3658_s8, %s2595_s0 }
  0x30   : > { %3656 = sst [smem:[#allocation8_spill]] %s3105_s30  ;;  %s3119_s23 = scalar_lea.vmem %s3660_s9, %s2595_s0 }
  0x31   : > { %3659 = sst [smem:[#allocation9_spill]] %s3114_s20  ;;  %s3125_s28 = scalar_lea.vmem %s3662_s10, %s2601_s24 }
  0x32   : > { %3661 = sst [smem:[#allocation10_spill]] %s3119_s23  ;;  %s2524_s26 = sld [smem:[#allocation4 + $0x1]] (!%p2523_p9) }
  0x33   : > { %3663 = sst [smem:[#allocation11_spill]] %s3125_s28  ;;  %s2525_s29 = sld [smem:[#allocation4 + $0x2]] (!%p2523_p9) }
  0x34   : > { %s2526_s3 = sld [smem:[#allocation4 + $0x3]] (!%p2523_p9)  ;;  %s2527_s18 = sld [smem:[#allocation4 + $0x4]] (!%p2523_p9) }
  0x35   : > { %s2528_s17 = sld [smem:[#allocation4 + $0x5]]  ;;  %s2529_s6 = sld [smem:[#allocation4 + $0x6]] }
  0x36   : > { %s2530_s8 = sld [smem:[#allocation4 + $0x7]]  ;;  %s3128_s4 = sld [smem:[#allocation4 + $0x8]] }
  0x37   : > { %s3130_s0 = sld [smem:[#allocation4 + $0x9]]  ;;  %s3132_s21 = sld [smem:[#allocation4 + $0xa]] }
  0x38   : > { %s3134_s5 = sld [smem:[#allocation4 + $0xb]]  ;;  %s3664_s9 = sld [smem:[#allocation13_spill]] }
  0x3e   : > { %s641_s10 = scalar_lea.vmem %s3664_s9, %s640_s16  ;;  %s646_s7 = scalar_lea.vmem %s3664_s9, %s2524_s26 }
  0x3f   : > { %v642_v0 = vld [vmem:[%s641_s10] sm:$0x1]  ;;  %s650_s20 = scalar_lea.vmem %s3664_s9, %s2525_s29  ;;  %s654_s11 = scalar_lea.vmem %s3664_s9, %s2526_s3 }
  0x40   : > { %v647_v1 = vld [vmem:[%s646_s7] sm:$0x1]  ;;  %644 = vst.msk [vmem:[#allocation2] sm:$0x1] %vm643_vm0, %v642_v0  ;;  %s658_s7 = scalar_lea.vmem %s3664_s9, %s2527_s18  ;;  %s662_s23 = scalar_lea.vmem %s3664_s9, %s2528_s17 }
  0x41   : > { %648 = vst.msk [vmem:[#allocation2 + $0x1] sm:$0x1] %vm643_vm0, %v647_v1  ;;  %v651_v2 = vld [vmem:[%s650_s20] sm:$0x1]  ;;  %s670_s26 = scalar_lea.vmem %s3664_s9, %s2530_s8  ;;  %s674_s3 = scalar_lea.vmem %s3664_s9, %s3128_s4 }
  0x42   : > { %v655_v3 = vld [vmem:[%s654_s11] sm:$0x1]  ;;  %652 = vst.msk [vmem:[#allocation2 + $0x2] sm:$0x1] %vm643_vm0, %v651_v2  ;;  %s666_s11 = scalar_lea.vmem %s3664_s9, %s2529_s6  ;;  %s678_s24 = scalar_lea.vmem %s3664_s9, %s3130_s0 }
  0x43   : > { %656 = vst.msk [vmem:[#allocation2 + $0x3] sm:$0x1] %vm643_vm0, %v655_v3  ;;  %v659_v4 = vld [vmem:[%s658_s7] sm:$0x1]  ;;  %s682_s15 = scalar_lea.vmem %s3664_s9, %s3132_s21  ;;  %s686_s10 = scalar_lea.vmem %s3664_s9, %s3134_s5 }
  0x44   : > { %v663_v5 = vld [vmem:[%s662_s23] sm:$0x1]  ;;  %660 = vst.msk [vmem:[#allocation2 + $0x4] sm:$0x1] %vm643_vm0, %v659_v4  ;;  %s2535_s4 = sld [smem:[#allocation4 + $0xc]]  ;;  %s2536_s0 = sld [smem:[#allocation4 + $0xd]] }
  0x45   : > { %664 = vst.msk [vmem:[#allocation2 + $0x5] sm:$0x1] %vm643_vm0, %v663_v5  ;;  %v667_v6 = vld [vmem:[%s666_s11] sm:$0x1]  ;;  %s2537_s16 = sld [smem:[#allocation4 + $0xe]]  ;;  %s2538_s23 = sld [smem:[#allocation4 + $0xf]] }
  0x46   : > { %v671_v7 = vld [vmem:[%s670_s26] sm:$0x1]  ;;  %668 = vst.msk [vmem:[#allocation2 + $0x6] sm:$0x1] %vm643_vm0, %v667_v6 }
  0x47   : > { %672 = vst.msk [vmem:[#allocation2 + $0x7] sm:$0x1] %vm643_vm0, %v671_v7  ;;  %v675_v8 = vld [vmem:[%s674_s3] sm:$0x1] }
  0x48   : > { %v679_v9 = vld [vmem:[%s678_s24] sm:$0x1]  ;;  %676 = vst.msk [vmem:[#allocation2 + $0x8] sm:$0x1] %vm643_vm0, %v675_v8 }
  0x49   : > { %680 = vst.msk [vmem:[#allocation2 + $0x9] sm:$0x1] %vm643_vm0, %v679_v9  ;;  %v683_v10 = vld [vmem:[%s682_s15] sm:$0x1] }
  0x4a   : > { %v687_v11 = vld [vmem:[%s686_s10] sm:$0x1]  ;;  %684 = vst.msk [vmem:[#allocation2 + $0xa] sm:$0x1] %vm643_vm0, %v683_v10  ;;  %s690_s30 = scalar_lea.vmem %s3664_s9, %s2535_s4  ;;  %s694_s20 = scalar_lea.vmem %s3664_s9, %s2536_s0 }
  0x4b   : > { %688 = vst.msk [vmem:[#allocation2 + $0xb] sm:$0x1] %vm643_vm0, %v687_v11  ;;  %v691_v12 = vld [vmem:[%s690_s30] sm:$0x1]  ;;  %s698_s17 = scalar_lea.vmem %s3664_s9, %s2537_s16  ;;  %s702_s18 = scalar_lea.vmem %s3664_s9, %s2538_s23 }
  0x4c   : > { %692 = vst.msk [vmem:[#allocation2 + $0xc] sm:$0x1] %vm643_vm0, %v691_v12  ;;  %v695_v13 = vld [vmem:[%s694_s20] sm:$0x1] }
  0x4d   : > { %v699_v14 = vld [vmem:[%s698_s17] sm:$0x1]  ;;  %696 = vst.msk [vmem:[#allocation2 + $0xd] sm:$0x1] %vm643_vm0, %v695_v13 }
  0x4e   : > { %700 = vst.msk [vmem:[#allocation2 + $0xe] sm:$0x1] %vm643_vm0, %v699_v14  ;;  %v703_v15 = vld [vmem:[%s702_s18] sm:$0x1] }
  0x4f   : > { %704 = vst.msk [vmem:[#allocation2 + $0xf] sm:$0x1] %vm643_vm0, %v703_v15 }
  0x50 PF: > { %v3204_v16 = vld [vmem:[#allocation2] sm:$0xff]  ;;  %vm710_vm1 = vcmask 261120   ;;  %v2968_v24 = vmov 0.0   ;;  %v2877_v25 = vld [vmem:[%s3090_s19 + $0x8] sm:$0xff]   ;;  %vm2969_vm2 = vmmov 0   ;;  %s3665_s14 = scalar_lea.vmem %s3608_s2, %s3080_s1  ;;  %s2970_s24 = smov 112  }
  0x51   : > { %v708_v18 = vmul.f32 %v3204_v16, %v3204_v16  ;;  %v2875_v22 = vld [vmem:[%s3090_s19] sm:$0xff]   ;;  %2660 = vmatprep.subr.bf16.mxu0 %v2968_v24  ;;  %2668 = vmatprep.subr.bf16.mxu1 %v2968_v24  ;;  %v2878_v26 = vld [vmem:[%s3095_s22 + $0x8] sm:$0xff]   ;;  %s2971_s6 = smov 120   ;;  %s2973_s8 = smov 4   ;;  %vm997_vm3 = vcmask 31744   ;;  %vm1166_vm4 = vcmask 64512  }
  0x52   : > { %v2876_v23 = vld [vmem:[%s3095_s22] sm:$0xff]   ;;  %2661 = vmatpush3.bf16.msra.mxu0 %v2875_v22  ;;  %2664 = vmatprep.mubr.msk.bf16.mxu0 %vm2969_vm2, %v2968_v24  ;;  %v2880_v42 = vld [vmem:[%s3100_s25 + $0x8] sm:$0xff]   ;;  %s2974_s15 = smov 124   ;;  %s3666_s0 = sld [smem:[#allocation22_spill]]  ;;  %vm3391_vm5 = vmpackc.low %vm1166_vm4, %vm1166_vm4  ;;  %vm1533_vm6 = vcmask 130048   ;;  %vm1974_vm7 = vcmask 195584  }
  0x53   : > { %v711_v20 = vsel %vm710_vm1, %v708_v18, 0.0  ;;  %2669 = vmatpush3.bf16.msra.mxu1 %v2876_v23  ;;  %2662 = vmatprep.subr.bf16.mxu0 %v2968_v24  ;;  %v2539_v36 = vld [vmem:[%s3665_s14] ss:$0 sm:$0xff]  ;;  %v3355_v23 = vld [vmem:[%s3618_s12 + $0x8] sm:$0xff]  ;;  %s3669_s11 = sld [smem:[#allocation23_spill]]  ;;  %s3670_s26 = sld [smem:[#allocation8_spill]] }
  0x54   : > { %712 = vadd.xlane.f32.xlu0 %v711_v20  ;;  %2670 = vmatprep.subr.bf16.mxu1 %v2968_v24  ;;  %v2879_v40 = vld [vmem:[%s3100_s25] sm:$0xff]   ;;  %s2972_s25 = smov 104   ;;  %s2975_s17 = smov 16   ;;  %vm2230_vm8 = vcmask 523264  }
  0x55   : > { %2672 = vmatprep.mubr.msk.bf16.mxu1 %vm2969_vm2, %v2968_v24  ;;  %s2976_s29 = smov 8   ;;  %s2977_s3 = smov 24  }
  0x56   : > { %v3206_v17 = vld [vmem:[#allocation2 + $0x8] sm:$0xff]  ;;  %2663 = vmatpush3.bf16.msra.mxu0 %v2877_v25  ;;  %s3671_s18 = sld [smem:[#allocation9_spill]]  ;;  %s3672_s19 = sld [smem:[#allocation10_spill]] }
  0x57   : > { %v709_v19 = vmul.f32 %v3206_v17, %v3206_v17  ;;  %2671 = vmatpush3.bf16.msra.mxu1 %v2878_v26  ;;  %2676 = vmatprep.subr.bf16.mxu0 %v2968_v24  ;;  %s3673_s22 = sld [smem:[#allocation11_spill]] }
  0x58   : > { %v3363_v26 = vld [vmem:[%s3666_s0] sm:$0xff] }
  0x59   : > { %v714_v21 = vsel %vm710_vm1, %v709_v19, 0.0 }
  0x5a   : > { %715 = vadd.xlane.f32.xlu0 %v714_v21 }
  0xe1   : > { %v713_v27 = vpop.xlane.xlu0 %712 }
  0xe2   : > { %v718_v28 = vmul.f32 0.03125, %v713_v27  ;;  %v3368_v27 = vld [vmem:[%s3666_s0 + $0x8] sm:$0xff] }
  0xe4   : > { %v720_v29 = vadd.f32 1e-05, %v718_v28 }
  0xe6   : > { %2891 = vrsqrt.f32 %v720_v29 }
  0xe7   : > { %v716_v30 = vpop.xlane.xlu0 %715 }
  0xe8   : > { %v719_v31 = vmul.f32 0.03125, %v716_v30  ;;  %v3375_v30 = vld [vmem:[%s3618_s12] sm:$0xff] }
  0xea   : > { %v721_v32 = vadd.f32 1e-05, %v719_v31 }
  0xec   : > { %2893 = vrsqrt.f32 %v721_v32 }
  0xf0   : > { %v2892_v33 = vpop.eup %2891 }
  0xf1   : > { %v724_v34 = vmul.f32 %v2892_v33, %v3204_v16 }
  0xf3   : > { %v732_v38 = vmul.f32 %v2539_v36, %v724_v34 }
  0xf6   : > { %v2894_v35 = vpop.eup %2893 }
  0xf7   : > { %v725_v37 = vmul.f32 %v2894_v35, %v3206_v17 }
  0xf9   : > { %v733_v39 = vmul.f32 %v2539_v36, %v725_v37 }
  0xfb   : > { %v734_v41 = vpack.c.bf16 %v733_v39, %v732_v38 }
  0xfd   : > { %2665 = vmatmul.mubr.msk.bf16.vlgmr.msra.gmra.mrb[0].mxu0 %vm710_vm1, %v734_v41  ;;  %2673 = vmatmul.mubr.msk.bf16.vlgmr.msra.gmra.mrb[0].mxu1 %vm710_vm1, %v734_v41 }
  0xfe   : > { %2677 = vmatpush3.bf16.msra.mxu0 %v2879_v40  ;;  %2680 = vmatprep.mubr.msk.bf16.mxu0 %vm2969_vm2, %v2968_v24 }
  0xff   : > { %2678 = vmatprep.subr.bf16.mxu0 %v2968_v24 }
 0x102   : > { %2679 = vmatpush3.bf16.msra.mxu0 %v2880_v42 }
 0x105   : > { %2681 = vmatmul.mubr.msk.bf16.vlgmr.msra.gmra.mrb[4].mxu0 %vm710_vm1, %v734_v41 }
 0x1d0   : > { %v3242_v43 = vpop.f32.mrb[0].mxu0  ;;  %v3244_v44 = vpop.f32.mrb[0].mxu1 }
 0x1d1   : > { %1038 = vrot.lane.b32.xlu0 %v3244_v44, %s2970_s24  ;;  %1032 = vrot.lane.b32.xlu1 %v3244_v44, %s2971_s6  ;;  %v2666_v45 = vpop.f32.mrb[1].mxu0  ;;  %v2674_v46 = vpop.f32.mrb[1].mxu1  ;;  %v1050_v58 = vsub.f32 0.0, %v3244_v44  ;;  %v933_v59 = vsub.f32 0.0, %v3242_v43  ;;  %v1122_v35 = vmul.f32 %v3363_v26, %v3244_v44 }
 0x1d2   : > { %v3250_v47 = vpop.f32.mrb[2].mxu0  ;;  %v3252_v48 = vpop.f32.mrb[2].mxu1 }
 0x1d3   : > { %v2667_v49 = vpop.f32.mrb[3].mxu0  ;;  %v2675_v50 = vpop.f32.mrb[3].mxu1  ;;  %v1051_v57 = vsub.f32 0.0, %v3252_v48  ;;  %v934_v60 = vsub.f32 0.0, %v3250_v47  ;;  %v1123_v34 = vmul.f32 %v3368_v27, %v3252_v48 }
 0x1d5   : > { %1044 = vrot.lane.b32.xlu1 %v3244_v44, %s2972_s25  ;;  %973 = vrot.lane.b32.xlu0 %v3242_v43, %s2973_s8 }
 0x1d8   : > { %v902_v51 = vpop.f32.mrb[4].mxu0 }
 0x1d9   : > { %915 = vrot.lane.b32.xlu1 %v3242_v43, %s2971_s6  ;;  %923 = vrot.lane.b32.xlu0 %v3250_v47, %s2970_s24  ;;  %v2682_v52 = vpop.f32.mrb[5].mxu0 }
 0x1da   : > { %v905_v53 = vpop.f32.mrb[6].mxu0 }
 0x1db   : > { %v2683_v54 = vpop.f32.mrb[7].mxu0  ;;  %v3262_v55 = vpack.c.bf16 %v905_v53, %v902_v51  ;;  %v3264_v56 = vpack.i.bf16 %v905_v53, %v902_v51 }
 0x1dd   : > { %921 = vrot.lane.b32.xlu1 %v3242_v43, %s2970_s24  ;;  %929 = vrot.lane.b32.xlu0 %v3250_v47, %s2972_s25 }
 0x1e1   : > { %1034 = vrot.lane.b32.xlu1 %v3252_v48, %s2971_s6  ;;  %1092 = vrot.lane.b32.xlu0 %v3252_v48, %s2973_s8 }
 0x1e5   : > { %1040 = vrot.lane.b32.xlu1 %v3252_v48, %s2970_s24  ;;  %1068 = vrot.lane.b32.xlu0 %v1051_v57, %s2974_s15 }
 0x1e9   : > { %1046 = vrot.lane.b32.xlu1 %v3252_v48, %s2972_s25 }
 0x1ed   : > { %917 = vrot.lane.b32.xlu1 %v3250_v47, %s2971_s6 }
 0x1f1   : > { %927 = vrot.lane.b32.xlu1 %v3242_v43, %s2972_s25 }
 0x1f5   : > { %1090 = vrot.lane.b32.xlu1 %v3244_v44, %s2973_s8  ;;  %v1006_v44 = vmul.f32 %v3363_v26, %v3242_v43  ;;  %v1007_v43 = vmul.f32 %v3368_v27, %v3250_v47 }
 0x1f9   : > { %1066 = vrot.lane.b32.xlu1 %v1050_v58, %s2974_s15 }
 0x1fd   : > { %949 = vrot.lane.b32.xlu1 %v933_v59, %s2974_s15 }
 0x201   : > { %975 = vrot.lane.b32.xlu1 %v3250_v47, %s2973_s8 }
 0x205   : > { %951 = vrot.lane.b32.xlu1 %v934_v60, %s2974_s15 }
 0x243   : > { %v3294_v61 = vpop.permute.xlu1 %1032  ;;  %v3298_v62 = vpop.permute.xlu0 %1038 }
 0x244   : > { %1094 = vrot.lane.b32.xlu1 %v3294_v61, %s2973_s8  ;;  %v1052_v2 = vsub.f32 0.0, %v3294_v61  ;;  %v1054_v4 = vsub.f32 0.0, %v3298_v62 }
 0x247   : > { %v3300_v63 = vpop.permute.xlu1 %1044  ;;  %v974_v1 = vpop.permute.xlu0 %973 }
 0x248   : > { %1098 = vrot.lane.b32.xlu1 %v3298_v62, %s2973_s8  ;;  %v1056_v7 = vsub.f32 0.0, %v3300_v63 }
 0x24b   : > { %v3304_v0 = vpop.permute.xlu1 %915  ;;  %v3317_v5 = vpop.permute.xlu0 %923 }
 0x24c   : > { %977 = vrot.lane.b32.xlu0 %v3304_v0, %s2973_s8  ;;  %1102 = vrot.lane.b32.xlu1 %v3300_v63, %s2973_s8  ;;  %v935_v12 = vsub.f32 0.0, %v3304_v0  ;;  %v938_v20 = vsub.f32 0.0, %v3317_v5 }
 0x24f   : > { %v3311_v3 = vpop.permute.xlu1 %921  ;;  %v3330_v9 = vpop.permute.xlu0 %929 }
 0x250   : > { %981 = vrot.lane.b32.xlu0 %v3311_v3, %s2973_s8  ;;  %1070 = vrot.lane.b32.xlu1 %v1052_v2, %s2974_s15  ;;  %v937_v10 = vsub.f32 0.0, %v3311_v3  ;;  %v940_v28 = vsub.f32 0.0, %v3330_v9 }
 0x253   : > { %v3319_v6 = vpop.permute.xlu1 %1034  ;;  %v1093_v13 = vpop.permute.xlu0 %1092 }
 0x254   : > { %1096 = vrot.lane.b32.xlu0 %v3319_v6, %s2973_s8  ;;  %1074 = vrot.lane.b32.xlu1 %v1054_v4, %s2974_s15  ;;  %v1053_v21 = vsub.f32 0.0, %v3319_v6 }
 0x257   : > { %v3325_v8 = vpop.permute.xlu1 %1040  ;;  %v1069_v19 = vpop.permute.xlu0 %1068 }
 0x258   : > { %1100 = vrot.lane.b32.xlu0 %v3325_v8, %s2973_s8  ;;  %1078 = vrot.lane.b32.xlu1 %v1056_v7, %s2974_s15  ;;  %v1115_v25 = vsel %vm997_vm3, %v1069_v19, %v1093_v13  ;;  %v1055_v29 = vsub.f32 0.0, %v3325_v8  ;;  %v1010_v19 = vmul.f32 %v3311_v3, %v3363_v26 }
 0x259   : > { %v1131_v31 = vmul.f32 %v1115_v25, %v3355_v23 }
 0x25b   : > { %v3333_v11 = vpop.permute.xlu1 %1046  ;;  %v1139_v38 = vadd.f32 %v1131_v31, %v1123_v34 }
 0x25c   : > { %1104 = vrot.lane.b32.xlu0 %v3333_v11, %s2973_s8  ;;  %957 = vrot.lane.b32.xlu1 %v937_v10, %s2974_s15  ;;  %v1057_v37 = vsub.f32 0.0, %v3333_v11 }
 0x25f   : > { %v3339_v14 = vpop.permute.xlu1 %917 }
 0x260   : > { %953 = vrot.lane.b32.xlu0 %v935_v12, %s2974_s15  ;;  %983 = vrot.lane.b32.xlu1 %v3317_v5, %s2973_s8  ;;  %v936_v15 = vsub.f32 0.0, %v3339_v14 }
 0x263   : > { %v3345_v18 = vpop.permute.xlu1 %927 }
 0x264   : > { %979 = vrot.lane.b32.xlu0 %v3339_v14, %s2973_s8  ;;  %955 = vrot.lane.b32.xlu1 %v936_v15, %s2974_s15  ;;  %v939_v48 = vsub.f32 0.0, %v3345_v18 }
 0x267   : > { %v1091_v22 = vpop.permute.xlu1 %1090 }
 0x268   : > { %1072 = vrot.lane.b32.xlu0 %v1053_v21, %s2974_s15  ;;  %959 = vrot.lane.b32.xlu1 %v938_v20, %s2974_s15 }
 0x26b   : > { %v1067_v32 = vpop.permute.xlu1 %1066 }
 0x26c   : > { %v1114_v33 = vsel %vm997_vm3, %v1067_v32, %v1091_v22  ;;  %1076 = vrot.lane.b32.xlu0 %v1055_v29, %s2974_s15  ;;  %963 = vrot.lane.b32.xlu1 %v940_v28, %s2974_s15  ;;  %v1008_v28 = vmul.f32 %v3304_v0, %v3363_v26  ;;  %v1124_v0 = vmul.f32 %v3294_v61, %v3363_v26 }
 0x26d   : > { %v1130_v36 = vmul.f32 %v1114_v33, %v3375_v30  ;;  %v1127_v61 = vmul.f32 %v3325_v8, %v3368_v27  ;;  %v1129_v8 = vmul.f32 %v3333_v11, %v3368_v27 }
 0x26f   : > { %v1138_v39 = vadd.f32 %v1130_v36, %v1122_v35  ;;  %v950_v40 = vpop.permute.xlu1 %949 }
 0x270   : > { %v998_v41 = vsel %vm997_vm3, %v950_v40, %v974_v1  ;;  %1080 = vrot.lane.b32.xlu0 %v1057_v37, %s2974_s15 }
 0x271   : > { %v2784_v45 = vpack.c.bf16 %v1139_v38, %v1138_v39  ;;  %v1014_v46 = vmul.f32 %v998_v41, %v3375_v30  ;;  %v1125_v38 = vmul.f32 %v3319_v6, %v3368_v27 }
 0x273   : > { %v1022_v49 = vadd.f32 %v1014_v46, %v1006_v44  ;;  %2786 = vmatprep.subr.msk.bf16.mxu1 %vm3391_vm5, %v2784_v45  ;;  %v976_v50 = vpop.permute.xlu1 %975 }
 0x274   : > { %961 = vrot.lane.b32.xlu0 %v939_v48, %s2974_s15  ;;  %2789 = vmatpush3.bf16.xpose.msk.msra.mxu1 %vm3391_vm5, %v2784_v45 }
 0x275   : > { %2688 = vmatprep.mubr.msk.f32.mxu1 %vm1166_vm4, %v1022_v49 }
 0x277   : > { %v952_v51 = vpop.permute.xlu1 %951 }
 0x278   : > { %v999_v52 = vsel %vm997_vm3, %v952_v51, %v976_v50  ;;  %985 = vrot.lane.b32.xlu0 %v3345_v18, %s2973_s8  ;;  %v1126_v50 = vmul.f32 %v3298_v62, %v3363_v26  ;;  %v1128_v62 = vmul.f32 %v3300_v63, %v3363_v26 }
 0x279   : > { %v1015_v53 = vmul.f32 %v999_v52, %v3355_v23 }
 0x27b   : > { %v1023_v54 = vadd.f32 %v1015_v53, %v1007_v43 }
 0x27c   : > { %987 = vrot.lane.b32.xlu0 %v3330_v9, %s2973_s8 }
 0x27d   : > { %2689 = vmatmul.mubr.msk.f32.vlgmr.msra.gmra.mrb[4].mxu1 %vm1166_vm4, %v1023_v54 }
 0x2b6   : > { %v1095_v57 = vpop.permute.xlu1 %1094 }
 0x2ba   : > { %v1099_v58 = vpop.permute.xlu1 %1098 }
 0x2be   : > { %v978_v59 = vpop.permute.xlu0 %977  ;;  %v1103_v60 = vpop.permute.xlu1 %1102 }
 0x2c2   : > { %v982_v1 = vpop.permute.xlu0 %981  ;;  %v1071_v2 = vpop.permute.xlu1 %1070 }
 0x2c3   : > { %v1116_v34 = vsel %vm997_vm3, %v1071_v2, %v1095_v57 }
 0x2c4   : > { %v1132_v3 = vmul.f32 %v1116_v34, %v3375_v30 }
 0x2c6   : > { %v1097_v4 = vpop.permute.xlu0 %1096  ;;  %v1075_v7 = vpop.permute.xlu1 %1074  ;;  %v1140_v41 = vadd.f32 %v1132_v3, %v1124_v0 }
 0x2c7   : > { %v1118_v36 = vsel %vm997_vm3, %v1075_v7, %v1099_v58  ;;  %v1009_v7 = vmul.f32 %v3339_v14, %v3368_v27 }
 0x2c8   : > { %v1134_v45 = vmul.f32 %v1118_v36, %v3375_v30 }
 0x2ca   : > { %v1101_v10 = vpop.permute.xlu0 %1100  ;;  %v1079_v12 = vpop.permute.xlu1 %1078  ;;  %v1142_v43 = vadd.f32 %v1134_v45, %v1126_v50 }
 0x2cb   : > { %v1120_v48 = vsel %vm997_vm3, %v1079_v12, %v1103_v60 }
 0x2cc   : > { %v1136_v53 = vmul.f32 %v1120_v48, %v3375_v30 }
 0x2ce   : > { %v1105_v13 = vpop.permute.xlu0 %1104  ;;  %v958_v47 = vpop.permute.xlu1 %957 }
 0x2cf   : > { %v1002_v15 = vsel %vm997_vm3, %v958_v47, %v982_v1 }
 0x2d0   : > { %v1018_v20 = vmul.f32 %v1002_v15, %v3375_v30  ;;  %v1011_v15 = vmul.f32 %v3317_v5, %v3368_v27 }
 0x2d2   : > { %v1026_v21 = vadd.f32 %v1018_v20, %v1010_v19  ;;  %v954_v22 = vpop.permute.xlu0 %953  ;;  %v984_v32 = vpop.permute.xlu1 %983  ;;  %v1012_v20 = vmul.f32 %v3345_v18, %v3363_v26 }
 0x2d3   : > { %v1000_v25 = vsel %vm997_vm3, %v954_v22, %v978_v59 }
 0x2d4   : > { %v1016_v29 = vmul.f32 %v1000_v25, %v3375_v30  ;;  %2702 = vmatprep.mubr.msk.f32.mxu1 %vm1166_vm4, %v1026_v21 }
 0x2d6   : > { %v1024_v31 = vadd.f32 %v1016_v29, %v1008_v28  ;;  %v980_v33 = vpop.permute.xlu0 %979  ;;  %v956_v39 = vpop.permute.xlu1 %955 }
 0x2d7   : > { %v1001_v52 = vsel %vm997_vm3, %v956_v39, %v980_v33 }
 0x2d8   : > { %2695 = vmatprep.mubr.msk.f32.mxu0 %vm1166_vm4, %v1024_v31  ;;  %v1017_v60 = vmul.f32 %v1001_v52, %v3355_v23  ;;  %v1013_v31 = vmul.f32 %v3330_v9, %v3368_v27  ;;  %v1523_v9 = vld [vmem:[%s3669_s11] sm:$0xff] }
 0x2da   : > { %v1073_v35 = vpop.permute.xlu0 %1072  ;;  %v960_v54 = vpop.permute.xlu1 %959  ;;  %v1025_v11 = vadd.f32 %v1017_v60, %v1009_v7 }
 0x2db   : > { %v1117_v37 = vsel %vm997_vm3, %v1073_v35, %v1097_v4  ;;  %v1003_v4 = vsel %vm997_vm3, %v960_v54, %v984_v32 }
 0x2dc   : > { %v1133_v40 = vmul.f32 %v1117_v37, %v3355_v23 }
 0x2de   : > { %v1141_v44 = vadd.f32 %v1133_v40, %v1125_v38  ;;  %v1077_v46 = vpop.permute.xlu0 %1076  ;;  %v964_v5 = vpop.permute.xlu1 %963 }
 0x2df   : > { %v1119_v49 = vsel %vm997_vm3, %v1077_v46, %v1101_v10  ;;  %v1144_v10 = vadd.f32 %v1136_v53, %v1128_v62 }
 0x2e0   : > { %v2790_v51 = vpack.c.bf16 %v1141_v44, %v1140_v41  ;;  %v1135_v6 = vmul.f32 %v1119_v49, %v3355_v23 }
 0x2e2   : > { %v1143_v57 = vadd.f32 %v1135_v6, %v1127_v61  ;;  %v1081_v58 = vpop.permute.xlu0 %1080  ;;  %2792 = vmatprep.subr.msk.bf16.mxu0 %vm3391_vm5, %v2790_v51 }
 0x2e3   : > { %v1121_v59 = vsel %vm997_vm3, %v1081_v58, %v1105_v13  ;;  %2795 = vmatpush3.bf16.xpose.msk.msra.mxu0 %vm3391_vm5, %v2790_v51  ;;  %v1019_v13 = vmul.f32 %v1003_v4, %v3355_v23 }
 0x2e4   : > { %v2796_v1 = vpack.c.bf16 %v1143_v57, %v1142_v43  ;;  %v1137_v2 = vmul.f32 %v1121_v59, %v3355_v23 }
 0x2e5   : > { %v1027_v21 = vadd.f32 %v1019_v13, %v1011_v15 }
 0x2e6   : > { %v1145_v63 = vadd.f32 %v1137_v2, %v1129_v8  ;;  %v962_v12 = vpop.permute.xlu0 %961  ;;  %2798 = vmatprep.subr.msk.bf16.mxu1 %vm3391_vm5, %v2796_v1 }
 0x2e7   : > { %2801 = vmatpush3.bf16.xpose.msk.msra.mxu1 %vm3391_vm5, %v2796_v1 }
 0x2e8   : > { %v2802_v47 = vpack.c.bf16 %v1145_v63, %v1144_v10 }
 0x2ea   : > { %v986_v19 = vpop.permute.xlu0 %985  ;;  %2696 = vmatmul.mubr.msk.f32.vlgmr.msra.gmra.mrb[8].mxu0 %vm1166_vm4, %v1025_v11  ;;  %2804 = vmatprep.subr.msk.bf16.mxu0 %vm3391_vm5, %v2802_v47 }
 0x2eb   : > { %v1004_v14 = vsel %vm997_vm3, %v962_v12, %v986_v19  ;;  %2807 = vmatpush3.bf16.xpose.msk.msra.mxu0 %vm3391_vm5, %v2802_v47 }
 0x2ec   : > { %v1020_v22 = vmul.f32 %v1004_v14, %v3375_v30  ;;  %2809 = vmatprep.subr.bf16.mxu0 %v3262_v55  ;;  %v1524_v30 = vld [vmem:[%s3669_s11 + $0x8] sm:$0xff] }
 0x2ee   : > { %v1028_v25 = vadd.f32 %v1020_v22, %v1012_v20  ;;  %v988_v28 = vpop.permute.xlu0 %987  ;;  %2703 = vmatmul.mubr.msk.f32.vlgmr.msra.gmra.mrb[6].mxu1 %vm1166_vm4, %v1027_v21 }
 0x2ef   : > { %v1005_v29 = vsel %vm997_vm3, %v964_v5, %v988_v28 }
 0x2f0   : > { %v1021_v42 = vmul.f32 %v1005_v29, %v3355_v23  ;;  %2709 = vmatprep.mubr.msk.f32.mxu0 %vm1166_vm4, %v1028_v25 }
 0x2f2   : > { %v1029_v18 = vadd.f32 %v1021_v42, %v1013_v31 }
 0x2f4   : > { %2710 = vmatmul.mubr.msk.f32.vlgmr.msra.gmra.mrb[10].mxu0 %vm1166_vm4, %v1029_v18 }
 0x2f5   : > { %2811 = vmatpush3.bf16.msra.mxu0 %v3262_v55 }
 0x350   : > { %v2690_v26 = vpop.f32.mrb[4].mxu1 }
 0x351   : > { %v1516_v32 = vmul.f32 0.35355338, %v2690_v26  ;;  %v1245_v33 = vpop.f32.mrb[5].mxu1 }
 0x352   : > { %v1515_v27 = vmul.f32 0.35355338, %v1245_v33 }
 0x353   : > { %v1526_v23 = vadd.f32 %v1524_v30, %v1516_v32 }
 0x354   : > { %v1525_v34 = vadd.f32 %v1523_v9, %v1515_v27 }
 0x355   : > { %v1537_v3 = vsel %vm1533_vm6, %v1526_v23, -inf }
 0x356   : > { %1538 = vmax.xlane.f32.xlu0 %v1537_v3  ;;  %v1534_v55 = vsel %vm1533_vm6, %v1525_v34, -inf }
 0x357   : > { %1535 = vmax.xlane.f32.xlu1 %v1534_v55 }
 0x3bd   : > { %v2697_v35 = vpop.f32.mrb[8].mxu0 }
 0x3be   : > { %v1518_v36 = vmul.f32 0.35355338, %v2697_v35  ;;  %v1332_v37 = vpop.f32.mrb[9].mxu0 }
 0x3bf   : > { %v1517_v0 = vmul.f32 0.35355338, %v1332_v37 }
 0x3c0   : > { %v1528_v38 = vadd.f32 %v1524_v30, %v1518_v36 }
 0x3c1   : > { %v2704_v39 = vpop.f32.mrb[6].mxu1  ;;  %v1527_v40 = vadd.f32 %v1523_v9, %v1517_v0 }
 0x3c2   : > { %v1520_v41 = vmul.f32 0.35355338, %v2704_v39  ;;  %v1419_v45 = vpop.f32.mrb[7].mxu1  ;;  %v1543_v44 = vsel %vm1533_vm6, %v1528_v38, -inf }
 0x3c3   : > { %v1519_v46 = vmul.f32 0.35355338, %v1419_v45  ;;  %1544 = vmax.xlane.f32.xlu1 %v1543_v44  ;;  %v1540_v48 = vsel %vm1533_vm6, %v1527_v40, -inf }
 0x3c4   : > { %1541 = vmax.xlane.f32.xlu0 %v1540_v48  ;;  %v1530_v49 = vadd.f32 %v1524_v30, %v1520_v41 }
 0x3c5   : > { %v1529_v50 = vadd.f32 %v1523_v9, %v1519_v46 }
 0x3c6   : > { %v1549_v61 = vsel %vm1533_vm6, %v1530_v49, -inf }
 0x3c7   : > { %1550 = vmax.xlane.f32.xlu1 %v1549_v61  ;;  %v2711_v51 = vpop.f32.mrb[10].mxu0  ;;  %v1546_v6 = vsel %vm1533_vm6, %v1529_v50, -inf }
 0x3c8   : > { %v1522_v52 = vmul.f32 0.35355338, %v2711_v51  ;;  %1547 = vmax.xlane.f32.xlu0 %v1546_v6  ;;  %v1506_v43 = vpop.f32.mrb[11].mxu0 }
 0x3c9   : > { %v1521_v53 = vmul.f32 0.35355338, %v1506_v43 }
 0x3ca   : > { %v1532_v54 = vadd.f32 %v1524_v30, %v1522_v52 }
 0x3cb   : > { %v1531_v57 = vadd.f32 %v1523_v9, %v1521_v53 }
 0x3cc   : > { %v1555_v58 = vsel %vm1533_vm6, %v1532_v54, -inf }
 0x3cd   : > { %1556 = vmax.xlane.f32.xlu1 %v1555_v58  ;;  %v1552_v62 = vsel %vm1533_vm6, %v1531_v57, -inf }
 0x3ce   : > { %1553 = vmax.xlane.f32.xlu0 %v1552_v62 }
 0x3e3   : > { %v1539_v59 = vpop.xlane.xlu0 %1538 }
 0x3e4   : > { %v1559_v8 = vsub.f32 %v1526_v23, %v1539_v59  ;;  %v1536_v60 = vpop.xlane.xlu1 %1535 }
 0x3e5   : > { %v1558_v1 = vsub.f32 %v1525_v34, %v1536_v60 }
 0x3e6   : > { %v1568_v2 = vmul.f32 1.442695, %v1559_v8 }
 0x3e7   : > { %v1566_v4 = vmul.f32 1.442695, %v1558_v1 }
 0x3e8   : > { %2895 = vpow2.f32 %v1568_v2 }
 0x3e9   : > { %2897 = vpow2.f32 %v1566_v4 }
 0x3f2   : > { %v2896_v7 = vpop.eup %2895 }
 0x3f3   : > { %v2898_v10 = vpop.eup %2897  ;;  %v1585_v63 = vsel %vm1533_vm6, %v2896_v7, 0.0 }
 0x3f4   : > { %1586 = vadd.xlane.f32.xlu1 %v1585_v63  ;;  %v1582_v12 = vsel %vm1533_vm6, %v2898_v10, 0.0 }
 0x3f5   : > { %1583 = vadd.xlane.f32.xlu0 %v1582_v12 }
 0x450   : > { %v1545_v11 = vpop.xlane.xlu1 %1544 }
 0x451   : > { %v1561_v13 = vsub.f32 %v1528_v38, %v1545_v11  ;;  %v1542_v47 = vpop.xlane.xlu0 %1541 }
 0x452   : > { %v1560_v15 = vsub.f32 %v1527_v40, %v1542_v47 }
 0x453   : > { %v1572_v19 = vmul.f32 1.442695, %v1561_v13 }
 0x454   : > { %v1570_v14 = vmul.f32 1.442695, %v1560_v15  ;;  %v1551_v20 = vpop.xlane.xlu1 %1550 }
 0x455   : > { %2899 = vpow2.f32 %v1572_v19  ;;  %v1563_v21 = vsub.f32 %v1530_v49, %v1551_v20  ;;  %v1548_v22 = vpop.xlane.xlu0 %1547 }
 0x456   : > { %2901 = vpow2.f32 %v1570_v14  ;;  %v1562_v5 = vsub.f32 %v1529_v50, %v1548_v22  ;;  %v2882_v22 = vld [vmem:[%s3670_s26 + $0x8] sm:$0xff]  }
 0x457   : > { %v1576_v25 = vmul.f32 1.442695, %v1563_v21  ;;  %v2881_v21 = vld [vmem:[%s3670_s26] sm:$0xff]  }
 0x458   : > { %v1574_v28 = vmul.f32 1.442695, %v1562_v5 }
 0x459   : > { %2903 = vpow2.f32 %v1576_v25 }
 0x45a   : > { %2905 = vpow2.f32 %v1574_v28  ;;  %v1557_v29 = vpop.xlane.xlu1 %1556 }
 0x45b   : > { %v1565_v31 = vsub.f32 %v1532_v54, %v1557_v29  ;;  %v1554_v42 = vpop.xlane.xlu0 %1553 }
 0x45c   : > { %v1564_v18 = vsub.f32 %v1531_v57, %v1554_v42 }
 0x45d   : > { %v1580_v26 = vmul.f32 1.442695, %v1565_v31 }
 0x45e   : > { %v1578_v30 = vmul.f32 1.442695, %v1564_v18 }
 0x45f   : > { %v3498_v32 = vpop.eup %2899  ;;  %2907 = vpow2.f32 %v1580_v26 }
 0x460   : > { %v2902_v33 = vpop.eup %2901  ;;  %2909 = vpow2.f32 %v1578_v30  ;;  %v1591_v9 = vsel %vm1533_vm6, %v3498_v32, 0.0 }
 0x461   : > { %1592 = vadd.xlane.f32.xlu1 %v1591_v9  ;;  %v1588_v27 = vsel %vm1533_vm6, %v2902_v33, 0.0 }
 0x462   : > { %1589 = vadd.xlane.f32.xlu0 %v1588_v27 }
 0x463   : > { %v2904_v23 = vpop.eup %2903 }
 0x464   : > { %v2906_v34 = vpop.eup %2905  ;;  %v1597_v3 = vsel %vm1533_vm6, %v2904_v23, 0.0 }
 0x465   : > { %1598 = vadd.xlane.f32.xlu1 %v1597_v3  ;;  %v1594_v55 = vsel %vm1533_vm6, %v2906_v34, 0.0 }
 0x466   : > { %1595 = vadd.xlane.f32.xlu0 %v1594_v55 }
 0x469   : > { %v3505_v35 = vpop.eup %2907 }
 0x46a   : > { %v2910_v36 = vpop.eup %2909  ;;  %v1603_v37 = vsel %vm1533_vm6, %v3505_v35, 0.0 }
 0x46b   : > { %1604 = vadd.xlane.f32.xlu1 %v1603_v37  ;;  %v1600_v0 = vsel %vm1533_vm6, %v2910_v36, 0.0 }
 0x46c   : > { %1601 = vadd.xlane.f32.xlu0 %v1600_v0 }
 0x47c   : > { %2851 = vrot.lane.b32.xlu1 %v3264_v56, %s2970_s24 }
 0x480   : > { %2856 = vrot.lane.b32.xlu1 %v3264_v56, %s2972_s25 }
 0x481   : > { %v1587_v38 = vpop.xlane.xlu1 %1586 }
 0x482   : > { %2911 = vrcp.f32 %v1587_v38  ;;  %2846 = vrot.lane.b32.xlu0 %v3264_v56, %s2971_s6  ;;  %v1584_v39 = vpop.xlane.xlu0 %1583  ;;  %s3674_s6 = sld [smem:[#allocation18_spill]] }
 0x483   : > { %2913 = vrcp.f32 %v1584_v39 }
 0x488   : > { %s3675_s25 = scalar_lea.vmem %s3674_s6, %s3080_s1  ;;  %s3676_s1 = sld [smem:[#allocation7_spill]] }
 0x48c   : > { %v2912_v40 = vpop.eup %2911 }
 0x48d   : > { %v2914_v41 = vpop.eup %2913  ;;  %v1615_v44 = vmul.f32 %v2912_v40, %v2896_v7 }
 0x48e   : > { %v1614_v45 = vmul.f32 %v2914_v41, %v2898_v10  ;;  %p2588_p10 = scmp.ne.s32.totalorder %s3676_s1, 1 }
 0x48f   : > { %s3677_s27 = sld [smem:[#allocation25_spill]] (!%p2588_p10)  ;;  %vm2979_vm9 = vmmov (!%p2588_p10), 0   ;;  %s3678_s23 = sld [smem:[#allocation24_spill]] (!%p2588_p10) }
 0x490   : > { %2716 = vmatprep.mubr.msk.f32.mxu0 %vm1533_vm6, %v1614_v45  ;;  %s3679_s30 = sld [smem:[#allocation26_spill]] (!%p2588_p10) }
 0x491   : > { %2717 = vmatmul.mubr.msk.f32.vlgmr.msra.gmra.mrb[12].mxu0 %vm1533_vm6, %v1615_v44 }
 0x4ee   : > { %v1593_v46 = vpop.xlane.xlu1 %1592 }
 0x4ef   : > { %v1590_v48 = vpop.xlane.xlu0 %1589 }
 0x4f0   : > { %2915 = vrcp.f32 %v1590_v48 }
 0x4f2   : > { %v1599_v49 = vpop.xlane.xlu1 %1598 }
 0x4f3   : > { %v1596_v50 = vpop.xlane.xlu0 %1595 }
 0x4f4   : > { %2917 = vrcp.f32 %v1596_v50 }
 0x4f5   : > { %2919 = vrcp.f32 %v1599_v49 }
 0x4f6   : > { %2921 = vrcp.f32 %v1593_v46 }
 0x4f8   : > { %v1605_v61 = vpop.xlane.xlu1 %1604 }
 0x4f9   : > { %v1602_v56 = vpop.xlane.xlu0 %1601 }
 0x4fa   : > { %v2916_v51 = vpop.eup %2915  ;;  %2923 = vrcp.f32 %v1602_v56 }
 0x4fb   : > { %2925 = vrcp.f32 %v1605_v61  ;;  %v1616_v6 = vmul.f32 %v2916_v51, %v2902_v33 }
 0x4fc   : > { %v2852_v52 = vpop.permute.xlu1 %2851 }
 0x4fd   : > { %v2854_v43 = vunpack.i.h.bf16 %v2852_v52  ;;  %v2853_v53 = vunpack.i.l.bf16 %v2852_v52  ;;  %2723 = vmatprep.mubr.msk.f32.mxu1 %vm1533_vm6, %v1616_v6  ;;  %v2847_v54 = vpop.permute.xlu0 %2846  ;;  %v2883_v6 = vld [vmem:[%s3671_s18] sm:$0xff]  }
 0x4fe   : > { %v2918_v57 = vpop.eup %2917  ;;  %v2849_v58 = vunpack.i.h.bf16 %v2847_v54  ;;  %v2848_v62 = vunpack.i.l.bf16 %v2847_v54  ;;  %v2884_v52 = vld [vmem:[%s3672_s19] sm:$0xff]  }
 0x4ff   : > { %v2816_v59 = vpack.c.bf16 %v2854_v43, %v2853_v53  ;;  %v1618_v8 = vmul.f32 %v2918_v57, %v2906_v34  ;;  %v2920_v60 = vpop.eup %2919  ;;  %v2886_v43 = vld [vmem:[%s3672_s19 + $0x8] sm:$0xff]  }
 0x500   : > { %v2812_v1 = vpack.c.bf16 %v2849_v58, %v2848_v62  ;;  %v2857_v2 = vpop.permute.xlu1 %2856  ;;  %v2922_v4 = vpop.eup %2921  ;;  %v1619_v63 = vmul.f32 %v2920_v60, %v2904_v23 }
 0x501   : > { %v2859_v7 = vunpack.i.h.bf16 %v2857_v2  ;;  %v2858_v10 = vunpack.i.l.bf16 %v2857_v2  ;;  %2817 = vmatprep.subr.bf16.mxu0 %v2816_v59  ;;  %2730 = vmatprep.mubr.msk.f32.mxu0 %vm1533_vm6, %v1618_v8  ;;  %v1617_v13 = vmul.f32 %v2922_v4, %v3498_v32  ;;  %v2576_v2 = vld [vmem:[%s3675_s25] ss:$0 sm:$0xff] }
 0x502   : > { %2813 = vmatprep.subr.bf16.mxu1 %v2812_v1  ;;  %2819 = vmatpush3.bf16.msra.mxu0 %v2816_v59 }
 0x503   : > { %v2820_v12 = vpack.c.bf16 %v2859_v7, %v2858_v10  ;;  %2815 = vmatpush3.bf16.msra.mxu1 %v2812_v1  ;;  %2740 = vmatprep.subr.bf16.mxu0 %v2968_v24 }
 0x504   : > { %v2924_v11 = vpop.eup %2923 }
 0x505   : > { %v2926_v47 = vpop.eup %2925  ;;  %2731 = vmatmul.mubr.msk.f32.vlgmr.msra.gmra.mrb[14].mxu0 %vm1533_vm6, %v1619_v63  ;;  %2821 = vmatprep.subr.bf16.mxu1 %v2820_v12  ;;  %v1620_v15 = vmul.f32 %v2924_v11, %v2910_v36  ;;  %v2888_v11 = vld [vmem:[%s3673_s22 + $0x8] sm:$0xff]  }
 0x506   : > { %2724 = vmatmul.mubr.msk.f32.vlgmr.msra.gmra.mrb[8].mxu1 %vm1533_vm6, %v1617_v13  ;;  %2744 = vmatprep.mubr.msk.bf16.mxu0 %vm2969_vm2, %v2968_v24  ;;  %v1621_v19 = vmul.f32 %v2926_v47, %v3505_v35  ;;  %v2889_v13 = vld [vmem:[%s3673_s22 + $0x10] sm:$0xff]   ;;  %v2890_v47 = vld [vmem:[%s3673_s22 + $0x18] sm:$0xff]  }
 0x507   : > { %2823 = vmatpush3.bf16.msra.mxu1 %v2820_v12  ;;  %2737 = vmatprep.mubr.msk.f32.mxu1 %vm1533_vm6, %v1620_v15  ;;  %v2887_v12 = vld [vmem:[%s3673_s22] sm:$0xff]  }
 0x508   : > { %2748 = vmatprep.subr.bf16.mxu1 %v2968_v24  ;;  %2741 = vmatpush3.bf16.msra.mxu0 %v2881_v21 }
 0x509   : > { %2742 = vmatprep.subr.bf16.mxu0 %v2968_v24 }
 0x50a   : > { %2738 = vmatmul.mubr.msk.f32.vlgmr.msra.gmra.mrb[10].mxu1 %vm1533_vm6, %v1621_v19 }
 0x50b   : > { %2752 = vmatprep.mubr.msk.bf16.mxu1 %vm2969_vm2, %v2968_v24  ;;  %2749 = vmatpush3.bf16.msra.mxu1 %v2883_v6 }
 0x50c   : > { %2743 = vmatpush3.bf16.msra.mxu0 %v2882_v22  ;;  %2750 = vmatprep.subr.bf16.mxu1 %v2968_v24 }
 0x50d   : > { %2756 = vmatprep.subr.bf16.mxu0 %v2968_v24 }
 0x564   : > { %v2718_v14 = vpop.f32.mrb[12].mxu0 }
 0x565   : > { %v1694_v20 = vpop.f32.mrb[13].mxu0 }
 0x5d8   : > { %v2732_v5 = vpop.f32.mrb[14].mxu0 }
 0x5d9   : > { %v2725_v25 = vpop.f32.mrb[8].mxu1  ;;  %v1856_v28 = vpop.f32.mrb[15].mxu0 }
 0x5da   : > { %v2865_v29 = vpack.i.bf16 %v2732_v5, %v1856_v28  ;;  %v1775_v31 = vpop.f32.mrb[9].mxu1 }
 0x5db   : > { %v2860_v42 = vpack.i.bf16 %v2725_v25, %v1775_v31 }
 0x5dc   : > { %2866 = vrot.lane.b32.xlu1 %v2865_v29, %s2975_s17 }
 0x5dd   : > { %2861 = vrot.lane.b32.xlu0 %v2860_v42, %s2976_s29  ;;  %v2739_v18 = vpop.f32.mrb[10].mxu1 }
 0x5de   : > { %v1937_v26 = vpop.f32.mrb[11].mxu1 }
 0x5df   : > { %v2870_v30 = vpack.i.bf16 %v2739_v18, %v1937_v26 }
 0x5e1   : > { %2871 = vrot.lane.b32.xlu0 %v2870_v30, %s2977_s3 }
 0x64e   : > { %v2867_v33 = vpop.permute.xlu1 %2866 }
 0x64f   : > { %v2862_v32 = vpop.permute.xlu0 %2861  ;;  %v2869_v3 = vunpack.i.h.bf16 %v2867_v33  ;;  %v2868_v55 = vunpack.i.l.bf16 %v2867_v33 }
 0x650   : > { %v2864_v9 = vunpack.i.h.bf16 %v2862_v32  ;;  %v2863_v27 = vunpack.i.l.bf16 %v2862_v32 }
 0x652   : > { %v1971_v23 = vsel %vm1166_vm4, %v2718_v14, %v2864_v9  ;;  %v1970_v34 = vsel %vm1166_vm4, %v1694_v20, %v2863_v27 }
 0x653   : > { %v2872_v35 = vpop.permute.xlu0 %2871  ;;  %v1972_v0 = vsel %vm1533_vm6, %v1970_v34, %v2868_v55  ;;  %v1973_v38 = vsel %vm1533_vm6, %v1971_v23, %v2869_v3 }
 0x654   : > { %v2874_v36 = vunpack.i.h.bf16 %v2872_v35  ;;  %v2873_v37 = vunpack.i.l.bf16 %v2872_v35 }
 0x656   : > { %v1976_v39 = vsel %vm1974_vm7, %v1973_v38, %v2874_v36  ;;  %v1975_v40 = vsel %vm1974_vm7, %v1972_v0, %v2873_v37 }
 0x657   : > { %v1977_v41 = vpack.c.bf16 %v1976_v39, %v1975_v40 }
 0x659   : > { %2745 = vmatmul.mubr.msk.bf16.vlgmr.msra.gmra.mrb[16].mxu0 %vm710_vm1, %v1977_v41 }
 0x65a   : > { %2760 = vmatprep.mubr.msk.bf16.mxu0 %vm2969_vm2, %v2968_v24  ;;  %2757 = vmatpush3.bf16.msra.mxu0 %v2884_v52 }
 0x65b   : > { %2758 = vmatprep.subr.bf16.mxu0 %v2968_v24 }
 0x65e   : > { %2759 = vmatpush3.bf16.msra.mxu0 %v2886_v43  ;;  %v2589_v43 = vld [vmem:[%s3678_s23] ss:$0 sm:$0xff] (!%p2588_p10) }
 0x72c   : > { %v2031_v45 = vpop.f32.mrb[16].mxu0 }
 0x72d   : > { %v3544_v44 = vadd.f32 %v2031_v45, %v3204_v16  ;;  %v2746_v46 = vpop.f32.mrb[17].mxu0 }
 0x72e   : > { %v2034_v48 = vpop.f32.mrb[18].mxu0  ;;  %v2978_v46 = vmov (!%p2588_p10), 0.0  }
 0x72f   : > { %v3547_v49 = vadd.f32 %v2034_v48, %v3206_v17  ;;  %v2747_v50 = vpop.f32.mrb[19].mxu0  ;;  %v2041_v61 = vmul.f32 %v3544_v44, %v3544_v44  ;;  %v2885_v17 = vld [vmem:[%s3671_s18 + $0x8] sm:$0xff]   ;;  %2776 = vmatprep.subr.bf16.mxu0 (!%p2588_p10), %v2978_v46 }
 0x730   : > { %2751 = vmatpush3.bf16.msra.mxu1 %v2885_v17  ;;  %v2940_v48 = vld [vmem:[%s3677_s27 + $0x8] sm:$0xff] (!%p2588_p10)  }
 0x731   : > { %v2043_v56 = vsel %vm710_vm1, %v2041_v61, 0.0  ;;  %v2042_v51 = vmul.f32 %v3547_v49, %v3547_v49  ;;  %2764 = vmatprep.subr.bf16.mxu1 %v2968_v24 }
 0x732   : > { %2044 = vadd.xlane.f32.xlu1 %v2043_v56 }
 0x733   : > { %v2046_v16 = vsel %vm710_vm1, %v2042_v51, 0.0 }
 0x734   : > { %2047 = vadd.xlane.f32.xlu0 %v2046_v16 }
 0x7bf   : > { %v2045_v53 = vpop.xlane.xlu1 %2044 }
 0x7c0   : > { %v2049_v54 = vmul.f32 0.03125, %v2045_v53 }
 0x7c1   : > { %v2048_v57 = vpop.xlane.xlu0 %2047 }
 0x7c2   : > { %v2051_v58 = vadd.f32 1e-05, %v2049_v54  ;;  %v2050_v62 = vmul.f32 0.03125, %v2048_v57 }
 0x7c4   : > { %2927 = vrsqrt.f32 %v2051_v58  ;;  %v2052_v59 = vadd.f32 1e-05, %v2050_v62 }
 0x7c6   : > { %2929 = vrsqrt.f32 %v2052_v59 }
 0x7ce   : > { %v2928_v8 = vpop.eup %2927 }
 0x7cf   : > { %v2055_v60 = vmul.f32 %v2928_v8, %v3544_v44 }
 0x7d0   : > { %v2930_v1 = vpop.eup %2929 }
 0x7d1   : > { %v2056_v4 = vmul.f32 %v2930_v1, %v3547_v49  ;;  %v2063_v7 = vmul.f32 %v2576_v2, %v2055_v60 }
 0x7d3   : > { %v2064_v10 = vmul.f32 %v2576_v2, %v2056_v4 }
 0x7d5   : > { %v2065_v63 = vpack.c.bf16 %v2064_v10, %v2063_v7 }
 0x7d7   : > { %2753 = vmatmul.mubr.msk.bf16.vlgmr.msra.gmra.mrb[12].mxu1 %vm710_vm1, %v2065_v63  ;;  %2761 = vmatmul.mubr.msk.bf16.vlgmr.msra.gmra.mrb[20].mxu0 %vm710_vm1, %v2065_v63 }
 0x7d8   : > { %2772 = vmatprep.mubr.msk.bf16.mxu1 %vm2969_vm2, %v2968_v24  ;;  %2765 = vmatpush3.bf16.msra.mxu1 %v2887_v12 }
 0x7d9   : > { %2766 = vmatprep.subr.bf16.mxu1 %v2968_v24  ;;  %2780 = vmatprep.mubr.msk.bf16.mxu0 (!%p2588_p10), %vm2979_vm9, %v2978_v46 }
 0x7dc   : > { %2767 = vmatpush3.bf16.msra.mxu1 %v2888_v11 }
 0x7dd   : > { %2768 = vmatprep.subr.bf16.mxu1 %v2968_v24 }
 0x7e0   : > { %2769 = vmatpush3.bf16.msra.mxu1 %v2889_v13 }
 0x7e1   : > { %2770 = vmatprep.subr.bf16.mxu1 %v2968_v24 }
 0x7e4   : > { %2771 = vmatpush3.bf16.msra.mxu1 %v2890_v47 }
 0x8aa   : > { %v2119_v15 = vpop.f32.mrb[12].mxu1  ;;  %v2176_v19 = vpop.f32.mrb[20].mxu0 }
 0x8ab   : > { %v2183_v14 = vsub.f32 0.0, %v2119_v15  ;;  %v2754_v20 = vpop.f32.mrb[13].mxu1  ;;  %v2762_v21 = vpop.f32.mrb[21].mxu0 }
 0x8ac   : > { %v2122_v22 = vpop.f32.mrb[14].mxu1  ;;  %v2179_v5 = vpop.f32.mrb[22].mxu0 }
 0x8ad   : > { %v2185_v25 = vmul.f32 1.442695, %v2183_v14  ;;  %v2184_v28 = vsub.f32 0.0, %v2122_v22  ;;  %v2755_v29 = vpop.f32.mrb[15].mxu1  ;;  %v2763_v31 = vpop.f32.mrb[23].mxu0 }
 0x8af   : > { %2931 = vpow2.f32 %v2185_v25  ;;  %v2187_v42 = vmul.f32 1.442695, %v2184_v28 }
 0x8b1   : > { %2933 = vpow2.f32 %v2187_v42 }
 0x8b9   : > { %v2932_v18 = vpop.eup %2931 }
 0x8ba   : > { %v2189_v26 = vadd.f32 1.0, %v2932_v18 }
 0x8bb   : > { %v2934_v30 = vpop.eup %2933 }
 0x8bc   : > { %2935 = vrcp.f32 %v2189_v26  ;;  %v2190_v24 = vadd.f32 1.0, %v2934_v30 }
 0x8be   : > { %2937 = vrcp.f32 %v2190_v24 }
 0x8c6   : > { %v2936_v32 = vpop.eup %2935 }
 0x8c7   : > { %v2193_v33 = vmul.f32 %v2936_v32, %v2119_v15 }
 0x8c8   : > { %v2938_v9 = vpop.eup %2937 }
 0x8c9   : > { %v2195_v27 = vmul.f32 %v2193_v33, %v2176_v19  ;;  %v2194_v23 = vmul.f32 %v2938_v9, %v2122_v22 }
 0x8cb   : > { %v2196_v34 = vmul.f32 %v2194_v23, %v2179_v5 }
 0x8cd   : > { %v2197_v3 = vpack.c.bf16 %v2196_v34, %v2195_v27 }
 0x8cf   : > { %2773 = vmatmul.mubr.msk.bf16.vlgmr.msra.gmra.mrb[16].mxu1 %vm2230_vm8, %v2197_v3 }
 0x9a1   : > { %2282 = sbr.rel (%p2588_p10) target bundleno = 2854 (0xb26), region = 88 }
 0x9a2   : > { %v2268_v55 = vpop.f32.mrb[16].mxu1 }
 0x9a3   : > { %v2275_v35 = vadd.f32 %v2268_v55, %v3544_v44  ;;  %v2774_v36 = vpop.f32.mrb[17].mxu1  ;;  %v2939_v44 = vld [vmem:[%s3677_s27] sm:$0xff] (!%p2588_p10)  }
 0x9a4   : > { %v2271_v37 = vpop.f32.mrb[18].mxu1  ;;  %2777 = vmatpush3.bf16.msra.mxu0 (!%p2588_p10), %v2939_v44 }
 0x9a5   : > { %2277 = vst.msk [vmem:[#allocation2] sm:$0xff] %vm710_vm1, %v2275_v35  ;;  %v2276_v0 = vadd.f32 %v2271_v37, %v3547_v49  ;;  %v2775_v38 = vpop.f32.mrb[19].mxu1  ;;  %v2284_v39 = vmul.f32 (!%p2588_p10), %v2275_v35, %v2275_v35  ;;  %2778 = vmatprep.subr.bf16.mxu0 (!%p2588_p10), %v2978_v46 }
 0x9a7   : > { %2278 = vst.msk [vmem:[#allocation2 + $0x8] sm:$0xff] %vm710_vm1, %v2276_v0  ;;  %v2285_v40 = vmul.f32 (!%p2588_p10), %v2276_v0, %v2276_v0  ;;  %v2286_v41 = vsel (!%p2588_p10), %vm710_vm1, %v2284_v39, 0.0 }
 0x9a8   : > { %2287 = vadd.xlane.f32.xlu0 %v2286_v41  ;;  %2779 = vmatpush3.bf16.msra.mxu0 %v2940_v48 }
 0x9a9   : > { %v2289_v45 = vsel %vm710_vm1, %v2285_v40, 0.0 }
 0x9ac   : > { %2290 = vadd.xlane.f32.xlu0 %v2289_v45 }
 0xa35   : > { %v2288_v49 = vpop.xlane.xlu0 %2287 }
 0xa36   : > { %v2292_v50 = vmul.f32 0.03125, %v2288_v49 }
 0xa38   : > { %v2294_v61 = vadd.f32 1e-05, %v2292_v50 }
 0xa39   : > { %v2291_v56 = vpop.xlane.xlu0 %2290 }
 0xa3a   : > { %2941 = vrsqrt.f32 %v2294_v61  ;;  %v2293_v51 = vmul.f32 0.03125, %v2291_v56 }
 0xa3c   : > { %v2295_v16 = vadd.f32 1e-05, %v2293_v51 }
 0xa3e   : > { %2943 = vrsqrt.f32 %v2295_v16 }
 0xa44   : > { %v2942_v6 = vpop.eup %2941 }
 0xa45   : > { %v2298_v52 = vmul.f32 %v2942_v6, %v2275_v35 }
 0xa47   : > { %v2306_v57 = vmul.f32 %v2589_v43, %v2298_v52 }
 0xa48   : > { %v2944_v17 = vpop.eup %2943 }
 0xa49   : > { %v2299_v53 = vmul.f32 %v2944_v17, %v2276_v0 }
 0xa4b   : > { %v2307_v54 = vmul.f32 %v2589_v43, %v2299_v53 }
 0xa4d   : > { %v2308_v58 = vpack.c.bf16 %v2307_v54, %v2306_v57 }
 0xa4f   : > { %2781 = vmatmul.mubr.msk.bf16.vlgmr.msra.gmra.mrb[0].mxu0 %vm710_vm1, %v2308_v58 }
 0xb22   : > { %v2362_v62 = vpop.f32.mrb[0].mxu0 }
 0xb23   : > { %2369 = vst [vmem:[%s3679_s30] sm:$0xff] %v2362_v62  ;;  %v2782_v59 = vpop.f32.mrb[1].mxu0 }
 0xb24   : > { %v2365_v8 = vpop.f32.mrb[2].mxu0 }
 0xb25   : > { %2370 = vst [vmem:[%s3679_s30 + $0x8] sm:$0xff] %v2365_v8  ;;  %v2783_v60 = vpop.f32.mrb[3].mxu0 }
 0xb26 PF: > { %s3680_s28 = sld [smem:[#allocation6_spill]] }
 0xb2c   : > { %s32_s26 = sadd.s32 1, %s3680_s28  }
 0xb2d   : > { %p29_p11 = scmp.ge.s32.totalorder %s32_s26, 4  }
 0xb2f   :  { %31 = sbr.rel (!%p29_p11) target bundleno = 25 (0x19), region = 154 }

</bundles_post_ra>
